<compile_context>
chip_gen: v7x
topology: tpu7x:2x2x1
jax: 0.10.0
libtpu: 0.0.40
codegen_flags: <defaults>
</compile_context>

<pallas_src>
import jax
import jax.numpy as jnp
from jax.experimental import pallas as pl
from jax.experimental.pallas import tpu as pltpu

EPS = 1e-6


def _vmem_limit_bytes():
    # Generation-specific scoped-VMEM budget: ~100 MiB on v5e/v6e (128 MiB
    # physical), conservative 48 MiB fallback (fits v7x's 64 MiB/TC).
    try:
        cap = int(pltpu.get_tpu_info().vmem_capacity_bytes)
        if cap >= 100 * 1024 * 1024:
            return 100 * 1024 * 1024
    except Exception:
        pass
    return 48 * 1024 * 1024


VMEM_LIMIT = _vmem_limit_bytes()


def _cparams(sem):
    return pltpu.CompilerParams(dimension_semantics=sem,
                                vmem_limit_bytes=VMEM_LIMIT)


# ---------------------------------------------------------------------------
# Kernel 1: fused RMSNorm (cached) + fused QKV + RoPE + causal attention +
#           per-head output projection accumulated into the residual stream.
# ---------------------------------------------------------------------------
def attn_kernel(x_ref, wn1_ref, wqkv_ref, wo_ref, cos_ref, sins_ref, mask_ref,
                xmid_ref, hn_ref):
    h = pl.program_id(1)

    # RMSNorm once per batch element (h == 0), cached bf16 in VMEM scratch.
    @pl.when(h == 0)
    def _():
        x = x_ref[0]                                     # (S, D) f32
        ms = jnp.mean(x * x, axis=-1, keepdims=True)
        hn_ref[...] = (x * jax.lax.rsqrt(ms + EPS)
                       * wn1_ref[...]).astype(jnp.bfloat16)

    hn = hn_ref[...]                                     # (S, D) bf16

    # Single fused QKV matmul per head: (S, D) @ (D, 3*hd) -> (S, 3*hd).
    # The 1/sqrt(hd) attention scale is pre-folded into the Q weight slice.
    qkv = jnp.dot(hn, wqkv_ref[0], preferred_element_type=jnp.float32)
    hd = qkv.shape[-1] // 3
    q = qkv[:, :hd]
    k = qkv[:, hd:2 * hd]
    v = qkv[:, 2 * hd:]

    cos = cos_ref[...]                                   # (S, hd) f32
    sins = sins_ref[...]                                 # sign folded into sin
    # rotate_half(t) == roll(t, hd//2) * [-1,...,-1,+1,...,+1]; the sign lives
    # in `sins`, so RoPE is two multiplies + one XLU roll (no slice/concat).
    q = q * cos + pltpu.roll(q, hd // 2, axis=1) * sins
    k = k * cos + pltpu.roll(k, hd // 2, axis=1) * sins

    scores = jax.lax.dot_general(
        q.astype(jnp.bfloat16), k.astype(jnp.bfloat16),
        (((1,), (1,)), ((), ())),
        preferred_element_type=jnp.float32)              # (S, S) f32
    scores = scores + mask_ref[...]                      # precomputed causal mask

    m = jnp.max(scores, axis=-1, keepdims=True)
    p = jnp.exp(scores - m)
    denom = jnp.sum(p, axis=-1, keepdims=True)
    p = p * pl.reciprocal(denom, approx=True)            # divide -> EUP slot

    ctx = jnp.dot(p.astype(jnp.bfloat16), v.astype(jnp.bfloat16),
                  preferred_element_type=jnp.float32)    # (S, hd)

    # Fused per-head output projection; heads accumulate into the resident
    # (1, S, D) output block -> no (B, H, S, hd) intermediate in HBM.
    partial = jnp.dot(ctx.astype(jnp.bfloat16), wo_ref[0],
                      preferred_element_type=jnp.float32)

    @pl.when(h == 0)
    def _():
        xmid_ref[0] = x_ref[0] + partial

    @pl.when(h > 0)
    def _():
        xmid_ref[0] = xmid_ref[0] + partial


# ---------------------------------------------------------------------------
# Kernel 2: RMSNorm (cached bf16) + SwiGLU MLP streamed over FFN tiles
#           with gate|up fused into one matmul + residual.
# ---------------------------------------------------------------------------
def mlp_kernel(x_ref, wn2_ref, wgu_ref, wd_ref, y_ref, h2_ref):
    f = pl.program_id(1)

    @pl.when(f == 0)
    def _():
        x = x_ref[0]
        ms = jnp.mean(x * x, axis=-1, keepdims=True)
        h2_ref[...] = (x * jax.lax.rsqrt(ms + EPS)
                       * wn2_ref[...]).astype(jnp.bfloat16)

    h2 = h2_ref[...]                                     # (S, D) bf16, cached
    gu = jnp.dot(h2, wgu_ref[0], preferred_element_type=jnp.float32)  # (S, 2*tf)
    tf = gu.shape[-1] // 2
    g = gu[:, :tf]
    u = gu[:, tf:]
    act = (g * jax.nn.sigmoid(g) * u).astype(jnp.bfloat16)   # SiLU(g) * up
    partial = jnp.dot(act, wd_ref[...], preferred_element_type=jnp.float32)

    @pl.when(f == 0)
    def _():
        y_ref[0] = x_ref[0] + partial

    @pl.when(f > 0)
    def _():
        y_ref[0] = y_ref[0] + partial


# ---------------------------------------------------------------------------
# Kernel 3: final RMSNorm + vocab-tiled LM head, last sequence position only,
#           all batch rows carried in one block (W_lm streamed once total).
# ---------------------------------------------------------------------------
def lm_head_kernel(ylast_ref, wnf_ref, wlm_ref, logits_ref):
    y = ylast_ref[...]                                   # (B, D)
    ms = jnp.mean(y * y, axis=-1, keepdims=True)
    hn = (y * jax.lax.rsqrt(ms + EPS) * wnf_ref[...]).astype(jnp.bfloat16)
    logits_ref[...] = jnp.dot(hn, wlm_ref[...],
                              preferred_element_type=jnp.float32)


# ---------------------------------------------------------------------------
# Wrappers
# ---------------------------------------------------------------------------
def attention_block(x, wn1, wqkv_h, wo_h, cos, sins, mask):
    B, S, D = x.shape
    H, _, hd3 = wqkv_h.shape
    hd = hd3 // 3
    return pl.pallas_call(
        attn_kernel,
        out_shape=jax.ShapeDtypeStruct((B, S, D), jnp.float32),
        grid=(B, H),
        in_specs=[
            pl.BlockSpec((1, S, D), lambda b, h: (b, 0, 0)),
            pl.BlockSpec((1, D), lambda b, h: (0, 0)),
            pl.BlockSpec((1, D, hd3), lambda b, h: (h, 0, 0)),
            pl.BlockSpec((1, hd, D), lambda b, h: (h, 0, 0)),
            pl.BlockSpec((S, hd), lambda b, h: (0, 0)),
            pl.BlockSpec((S, hd), lambda b, h: (0, 0)),
            pl.BlockSpec((S, S), lambda b, h: (0, 0)),
        ],
        out_specs=pl.BlockSpec((1, S, D), lambda b, h: (b, 0, 0)),
        scratch_shapes=[pltpu.VMEM((S, D), jnp.bfloat16)],
        compiler_params=_cparams(("parallel", "arbitrary")),
    )(x, wn1, wqkv_h, wo_h, cos, sins, mask)


def swiglu_mlp(x, wn2, wgu, wd):
    B, S, D = x.shape
    n_tiles = wgu.shape[0]
    tf = wgu.shape[-1] // 2
    return pl.pallas_call(
        mlp_kernel,
        out_shape=jax.ShapeDtypeStruct((B, S, D), jnp.float32),
        grid=(B, n_tiles),
        in_specs=[
            pl.BlockSpec((1, S, D), lambda b, f: (b, 0, 0)),
            pl.BlockSpec((1, D), lambda b, f: (0, 0)),
            pl.BlockSpec((1, D, 2 * tf), lambda b, f: (f, 0, 0)),
            pl.BlockSpec((tf, D), lambda b, f: (f, 0)),
        ],
        out_specs=pl.BlockSpec((1, S, D), lambda b, f: (b, 0, 0)),
        scratch_shapes=[pltpu.VMEM((S, D), jnp.bfloat16)],
        compiler_params=_cparams(("parallel", "arbitrary")),
    )(x, wn2, wgu, wd)


def lm_head_last(y_last, wnf, wlm, tv=2048):
    B, D = y_last.shape
    V = wlm.shape[-1]
    tv = min(tv, V)
    assert V % tv == 0
    return pl.pallas_call(
        lm_head_kernel,
        out_shape=jax.ShapeDtypeStruct((B, V), jnp.float32),
        grid=(V // tv,),
        in_specs=[
            pl.BlockSpec((B, D), lambda v: (0, 0)),
            pl.BlockSpec((1, D), lambda v: (0, 0)),
            pl.BlockSpec((D, tv), lambda v: (0, v)),
        ],
        out_specs=pl.BlockSpec((B, tv), lambda v: (0, v)),
        compiler_params=_cparams(("parallel",)),
    )(y_last, wnf, wlm)


def rope_tables(seq_len, head_dim, base=10000.0):
    half = head_dim // 2
    inv_freq = 1.0 / (base ** (jnp.arange(half, dtype=jnp.float32) / half))
    pos = jnp.arange(seq_len, dtype=jnp.float32)
    ang = pos[:, None] * inv_freq[None, :]                  # (S, hd/2)
    cos = jnp.concatenate([jnp.cos(ang), jnp.cos(ang)], axis=-1)
    # Fold rotate_half's sign into the sin table (used with pltpu.roll).
    sin_signed = jnp.concatenate([-jnp.sin(ang), jnp.sin(ang)], axis=-1)
    return cos, sin_signed


def causal_mask(seq_len):
    row = jnp.arange(seq_len)[:, None]
    col = jnp.arange(seq_len)[None, :]
    return jnp.where(row >= col, 0.0, -1e30).astype(jnp.float32)


@jax.jit
def qwen_forward(token_ids, params):
    # glue: embedding gather (single HBM gather, no Pallas kernel needed)
    x = jnp.take(params["embed"], token_ids, axis=0)        # (B, S, D) f32

    x_mid = attention_block(x, params["wn1"], params["wqkv_h"], params["wo_h"],
                            params["cos"], params["sin_signed"], params["mask"])
    y = swiglu_mlp(x_mid, params["wn2"], params["wgu"], params["wd"])

    # glue: generation only consumes the last position -> slice before LM head
    y_last = y[:, -1, :]                                     # (B, D)
    logits = lm_head_last(y_last, params["wnf"], params["wlm"])
    return logits                                            # (B, V)


if __name__ == "__main__":
    # Small Qwen-like config, lane-friendly: hd = 128, F/V multiples of 128.
    B, S, D, H, F, V = 2, 8, 256, 2, 512, 256
    hd = D // H
    TF = min(256, F)                                         # MLP FFN tile

    key = jax.random.PRNGKey(0)
    ks = jax.random.split(key, 10)

    def init(k, shape, scale):
        return scale * jax.random.normal(k, shape, dtype=jnp.float32)

    wq = init(ks[0], (D, D), 0.05)
    wk = init(ks[1], (D, D), 0.05)
    wv = init(ks[2], (D, D), 0.05)
    wo = init(ks[3], (D, D), 0.05)
    cos, sin_signed = rope_tables(S, hd)

    # Per-head layouts keep head_dim as the lane axis in-kernel; Q/K/V are
    # concatenated into one (H, D, 3*hd) block so the kernel does one matmul,
    # and the 1/sqrt(hd) attention scale is baked into the Q slice.
    scale = 1.0 / (hd ** 0.5)
    wq_h = wq.reshape(D, H, hd).transpose(1, 0, 2) * scale   # (H, D, hd)
    wk_h = wk.reshape(D, H, hd).transpose(1, 0, 2)
    wv_h = wv.reshape(D, H, hd).transpose(1, 0, 2)
    wqkv_h = jnp.concatenate([wq_h, wk_h, wv_h], axis=-1).astype(jnp.bfloat16)

    # Gate|up weights interleaved per FFN tile -> one (D, 2*TF) block per step.
    wg = init(ks[5], (D, F), 0.05)
    wu = init(ks[6], (D, F), 0.05)
    wgu = jnp.concatenate(
        [wg.reshape(D, F // TF, TF), wu.reshape(D, F // TF, TF)], axis=-1
    ).transpose(1, 0, 2).astype(jnp.bfloat16)                # (F//TF, D, 2*TF)

    params = {
        "embed": init(ks[4], (V, D), 0.02),
        "wn1": jnp.ones((1, D), jnp.float32),
        "wqkv_h": wqkv_h,
        "wo_h": wo.reshape(H, hd, D).astype(jnp.bfloat16),
        "cos": cos,
        "sin_signed": sin_signed,
        "mask": causal_mask(S),
        "wn2": jnp.ones((1, D), jnp.float32),
        "wgu": wgu,
        "wd": init(ks[7], (F, D), 0.05).astype(jnp.bfloat16),
        "wnf": jnp.ones((1, D), jnp.float32),
        "wlm": init(ks[8], (D, V), 0.05).astype(jnp.bfloat16),
    }

    token_ids = jax.random.randint(ks[9], (B, S), 0, V, dtype=jnp.int32)

    logits = qwen_forward(token_ids, params)
    logits = jax.block_until_ready(logits)

    # glue: greedy next-token selection (temperature/top-p sampling and the
    # autoregressive loop / string decode are not translatable to Pallas).
    next_tokens = jnp.argmax(logits, axis=-1)
    next_tokens = jax.block_until_ready(next_tokens)

    assert logits.shape == (B, V)
    assert next_tokens.shape == (B,)
    assert bool(jnp.all(jnp.isfinite(logits)))
    print("KERNEL_OK")
</pallas_src>

<mosaic_0001>
module attributes {stable_mosaic.version = 11 : i64} {
  func.func @mlp_kernel(%arg0: i32, %arg1: i32, %arg2: memref<1x8x256xf32, #tpu.memory_space<vmem>>, %arg3: memref<1x256xf32, #tpu.memory_space<vmem>>, %arg4: memref<1x256x512xbf16, #tpu.memory_space<vmem>>, %arg5: memref<256x256xbf16, #tpu.memory_space<vmem>>, %arg6: memref<1x8x256xf32, #tpu.memory_space<vmem>>, %arg7: memref<8x256xbf16, #tpu.memory_space<vmem>>) attributes {dimension_semantics = [#tpu.dimension_semantics<parallel>, #tpu.dimension_semantics<arbitrary>], iteration_bounds = array<i64: 2, 2>, scalar_prefetch = 0 : i64, scratch_operands = 1 : i64, tpu.core_type = #tpu.core_type<tc>, window_params = [{transform_indices = @transform_0, window_bounds = array<i64: 1, 8, 256>}, {pipeline_mode = #tpu.pipeline_mode<synchronous>, transform_indices = @transform_1, window_bounds = array<i64: 1, 256>}, {transform_indices = @transform_2, window_bounds = array<i64: 1, 256, 512>}, {transform_indices = @transform_3, window_bounds = array<i64: 256, 256>}, {transform_indices = @transform_4, window_bounds = array<i64: 1, 8, 256>}]} {
    %c0_i32 = arith.constant 0 : i32
    %0 = arith.cmpi eq, %arg1, %c0_i32 : i32
    %1 = arith.extui %0 : i1 to i32
    %c0_i32_0 = arith.constant 0 : i32
    %2 = arith.cmpi ne, %1, %c0_i32_0 : i32
    scf.if %2 {
      %c0_13 = arith.constant 0 : index
      %c0_14 = arith.constant 0 : index
      %c0_15 = arith.constant 0 : index
      %25 = vector.load %arg2[%c0_13, %c0_14, %c0_15] : memref<1x8x256xf32, #tpu.memory_space<vmem>>, vector<1x8x256xf32>
      %26 = vector.shape_cast %25 : vector<1x8x256xf32> to vector<8x256xf32>
      %27 = arith.mulf %26, %26 : vector<8x256xf32>
      %cst_16 = arith.constant dense<0.000000e+00> : vector<8xf32>
      %28 = vector.multi_reduction <add>, %27, %cst_16 [1] : vector<8x256xf32> to vector<8xf32>
      %29 = vector.shape_cast %28 : vector<8xf32> to vector<8x1xf32>
      %cst_17 = arith.constant 2.560000e+02 : f32
      %30 = vector.broadcast %cst_17 : f32 to vector<8x1xf32>
      %31 = arith.divf %29, %30 : vector<8x1xf32>
      %cst_18 = arith.constant 9.99999997E-7 : f32
      %32 = vector.broadcast %cst_18 : f32 to vector<8x1xf32>
      %33 = arith.addf %31, %32 : vector<8x1xf32>
      %34 = math.rsqrt %33 : vector<8x1xf32>
      %35 = vector.broadcast %34 : vector<8x1xf32> to vector<8x256xf32>
      %36 = arith.mulf %26, %35 : vector<8x256xf32>
      %c0_19 = arith.constant 0 : index
      %c0_20 = arith.constant 0 : index
      %37 = vector.load %arg3[%c0_19, %c0_20] : memref<1x256xf32, #tpu.memory_space<vmem>>, vector<1x256xf32>
      %38 = vector.broadcast %37 : vector<1x256xf32> to vector<8x256xf32>
      %39 = arith.mulf %36, %38 : vector<8x256xf32>
      %40 = arith.truncf %39 : vector<8x256xf32> to vector<8x256xbf16>
      %c0_21 = arith.constant 0 : index
      %c0_22 = arith.constant 0 : index
      %41 = vector.load %arg7[%c0_21, %c0_22] : memref<8x256xbf16, #tpu.memory_space<vmem>>, vector<8x256xbf16>
      tpu.vector_store %arg7[%c0_21, %c0_22], %40 {strides = array<i32>} : memref<8x256xbf16, #tpu.memory_space<vmem>>, vector<8x256xbf16>,
    } else {
    }
    %c0 = arith.constant 0 : index
    %c0_1 = arith.constant 0 : index
    %3 = vector.load %arg7[%c0, %c0_1] : memref<8x256xbf16, #tpu.memory_space<vmem>>, vector<8x256xbf16>
    %c0_2 = arith.constant 0 : index
    %c0_3 = arith.constant 0 : index
    %c0_4 = arith.constant 0 : index
    %4 = vector.load %arg4[%c0_2, %c0_3, %c0_4] : memref<1x256x512xbf16, #tpu.memory_space<vmem>>, vector<1x256x512xbf16>
    %5 = vector.shape_cast %4 : vector<1x256x512xbf16> to vector<256x512xbf16>
    %cst = arith.constant dense<0.000000e+00> : vector<8x512xf32>
    %6 = tpu.matmul %3, %5, %cst {dimension_numbers = #tpu.dot_dimension_numbers<[1], [0], [0], [1], [0, 0, 1, 1], [], []>} : vector<8x256xbf16>, vector<256x512xbf16>, vector<8x512xf32> -> vector<8x512xf32>
    %7 = vector.extract_strided_slice %6 {offsets = [0, 0], sizes = [8, 256], strides = [1, 1]} : vector<8x512xf32> to vector<8x256xf32>
    %8 = vector.extract_strided_slice %6 {offsets = [0, 256], sizes = [8, 256], strides = [1, 1]} : vector<8x512xf32> to vector<8x256xf32>
    %9 = arith.negf %7 : vector<8x256xf32>
    %10 = math.exp %9 : vector<8x256xf32>
    %cst_5 = arith.constant 1.000000e+00 : f32
    %11 = vector.broadcast %cst_5 : f32 to vector<8x256xf32>
    %12 = arith.addf %11, %10 : vector<8x256xf32>
    %13 = arith.divf %11, %12 : vector<8x256xf32>
    %14 = arith.mulf %7, %13 : vector<8x256xf32>
    %15 = arith.mulf %14, %8 : vector<8x256xf32>
    %16 = arith.truncf %15 : vector<8x256xf32> to vector<8x256xbf16>
    %c0_6 = arith.constant 0 : index
    %c0_7 = arith.constant 0 : index
    %17 = vector.load %arg5[%c0_6, %c0_7] : memref<256x256xbf16, #tpu.memory_space<vmem>>, vector<256x256xbf16>
    %cst_8 = arith.constant dense<0.000000e+00> : vector<8x256xf32>
    %18 = tpu.matmul %16, %17, %cst_8 {dimension_numbers = #tpu.dot_dimension_numbers<[1], [0], [0], [1], [0, 0, 1, 1], [], []>} : vector<8x256xbf16>, vector<256x256xbf16>, vector<8x256xf32> -> vector<8x256xf32>
    %c0_i32_9 = arith.constant 0 : i32
    %19 = arith.cmpi eq, %arg1, %c0_i32_9 : i32
    %20 = arith.extui %19 : i1 to i32
    %c0_i32_10 = arith.constant 0 : i32
    %21 = arith.cmpi ne, %20, %c0_i32_10 : i32
    scf.if %21 {
      %c0_13 = arith.constant 0 : index
      %c0_14 = arith.constant 0 : index
      %c0_15 = arith.constant 0 : index
      %25 = vector.load %arg2[%c0_13, %c0_14, %c0_15] : memref<1x8x256xf32, #tpu.memory_space<vmem>>, vector<1x8x256xf32>
      %26 = vector.shape_cast %25 : vector<1x8x256xf32> to vector<8x256xf32>
      %27 = arith.addf %26, %18 : vector<8x256xf32>
      %c0_16 = arith.constant 0 : index
      %c0_17 = arith.constant 0 : index
      %c0_18 = arith.constant 0 : index
      %28 = vector.load %arg6[%c0_16, %c0_17, %c0_18] : memref<1x8x256xf32, #tpu.memory_space<vmem>>, vector<1x8x256xf32>
      %29 = vector.shape_cast %28 : vector<1x8x256xf32> to vector<8x256xf32>
      %30 = vector.shape_cast %27 : vector<8x256xf32> to vector<1x8x256xf32>
      tpu.vector_store %arg6[%c0_16, %c0_17, %c0_18], %30 {strides = array<i32>} : memref<1x8x256xf32, #tpu.memory_space<vmem>>, vector<1x8x256xf32>,
    } else {
    }
    %c0_i32_11 = arith.constant 0 : i32
    %22 = arith.cmpi sgt, %arg1, %c0_i32_11 : i32
    %23 = arith.extui %22 : i1 to i32
    %c0_i32_12 = arith.constant 0 : i32
    %24 = arith.cmpi ne, %23, %c0_i32_12 : i32
    scf.if %24 {
      %c0_13 = arith.constant 0 : index
      %c0_14 = arith.constant 0 : index
      %c0_15 = arith.constant 0 : index
      %25 = vector.load %arg6[%c0_13, %c0_14, %c0_15] : memref<1x8x256xf32, #tpu.memory_space<vmem>>, vector<1x8x256xf32>
      %26 = vector.shape_cast %25 : vector<1x8x256xf32> to vector<8x256xf32>
      %27 = arith.addf %26, %18 : vector<8x256xf32>
      %c0_16 = arith.constant 0 : index
      %c0_17 = arith.constant 0 : index
      %c0_18 = arith.constant 0 : index
      %28 = vector.load %arg6[%c0_16, %c0_17, %c0_18] : memref<1x8x256xf32, #tpu.memory_space<vmem>>, vector<1x8x256xf32>
      %29 = vector.shape_cast %28 : vector<1x8x256xf32> to vector<8x256xf32>
      %30 = vector.shape_cast %27 : vector<8x256xf32> to vector<1x8x256xf32>
      tpu.vector_store %arg6[%c0_16, %c0_17, %c0_18], %30 {strides = array<i32>} : memref<1x8x256xf32, #tpu.memory_space<vmem>>, vector<1x8x256xf32>,
    } else {
    }
    return
  }
  func.func @transform_0(%arg0: i32, %arg1: i32) -> (i32, i32, i32) {
    %c0_i32 = arith.constant 0 : i32
    %c0_i32_0 = arith.constant 0 : i32
    %c0_i32_1 = arith.constant 0 : i32
    return %arg0, %c0_i32, %c0_i32_0 : i32, i32, i32
  }
  func.func @transform_1(%arg0: i32, %arg1: i32) -> (i32, i32) {
    %c0_i32 = arith.constant 0 : i32
    %c0_i32_0 = arith.constant 0 : i32
    %c0_i32_1 = arith.constant 0 : i32
    return %c0_i32, %c0_i32_0 : i32, i32
  }
  func.func @transform_2(%arg0: i32, %arg1: i32) -> (i32, i32, i32) {
    %c0_i32 = arith.constant 0 : i32
    %c0_i32_0 = arith.constant 0 : i32
    %c0_i32_1 = arith.constant 0 : i32
    return %arg1, %c0_i32, %c0_i32_0 : i32, i32, i32
  }
  func.func @transform_3(%arg0: i32, %arg1: i32) -> (i32, i32) {
    %c0_i32 = arith.constant 0 : i32
    %c0_i32_0 = arith.constant 0 : i32
    return %arg1, %c0_i32 : i32, i32
  }
  func.func @transform_4(%arg0: i32, %arg1: i32) -> (i32, i32, i32) {
    %c0_i32 = arith.constant 0 : i32
    %c0_i32_0 = arith.constant 0 : i32
    %c0_i32_1 = arith.constant 0 : i32
    return %arg0, %c0_i32, %c0_i32_0 : i32, i32, i32
  }
}

module attributes {stable_mosaic.version = 11 : i64} {
  func.func @attn_kernel(%arg0: i32, %arg1: i32, %arg2: memref<1x8x256xf32, #tpu.memory_space<vmem>>, %arg3: memref<1x256xf32, #tpu.memory_space<vmem>>, %arg4: memref<1x256x384xbf16, #tpu.memory_space<vmem>>, %arg5: memref<1x128x256xbf16, #tpu.memory_space<vmem>>, %arg6: memref<8x128xf32, #tpu.memory_space<vmem>>, %arg7: memref<8x128xf32, #tpu.memory_space<vmem>>, %arg8: memref<8x8xf32, #tpu.memory_space<vmem>>, %arg9: memref<1x8x256xf32, #tpu.memory_space<vmem>>, %arg10: memref<8x256xbf16, #tpu.memory_space<vmem>>) attributes {dimension_semantics = [#tpu.dimension_semantics<parallel>, #tpu.dimension_semantics<arbitrary>], iteration_bounds = array<i64: 2, 2>, scalar_prefetch = 0 : i64, scratch_operands = 1 : i64, tpu.core_type = #tpu.core_type<tc>, window_params = [{transform_indices = @transform_0, window_bounds = array<i64: 1, 8, 256>}, {pipeline_mode = #tpu.pipeline_mode<synchronous>, transform_indices = @transform_1, window_bounds = array<i64: 1, 256>}, {transform_indices = @transform_2, window_bounds = array<i64: 1, 256, 384>}, {transform_indices = @transform_3, window_bounds = array<i64: 1, 128, 256>}, {pipeline_mode = #tpu.pipeline_mode<synchronous>, transform_indices = @transform_4, window_bounds = array<i64: 8, 128>}, {pipeline_mode = #tpu.pipeline_mode<synchronous>, transform_indices = @transform_5, window_bounds = array<i64: 8, 128>}, {pipeline_mode = #tpu.pipeline_mode<synchronous>, transform_indices = @transform_6, window_bounds = array<i64: 8, 8>}, {transform_indices = @transform_7, window_bounds = array<i64: 1, 8, 256>}]} {
    %c0_i32 = arith.constant 0 : i32
    %0 = arith.cmpi eq, %arg1, %c0_i32 : i32
    %1 = arith.extui %0 : i1 to i32
    %c0_i32_0 = arith.constant 0 : i32
    %2 = arith.cmpi ne, %1, %c0_i32_0 : i32
    scf.if %2 {
      %c0_24 = arith.constant 0 : index
      %c0_25 = arith.constant 0 : index
      %c0_26 = arith.constant 0 : index
      %48 = vector.load %arg2[%c0_24, %c0_25, %c0_26] : memref<1x8x256xf32, #tpu.memory_space<vmem>>, vector<1x8x256xf32>
      %49 = vector.shape_cast %48 : vector<1x8x256xf32> to vector<8x256xf32>
      %50 = arith.mulf %49, %49 : vector<8x256xf32>
      %cst_27 = arith.constant dense<0.000000e+00> : vector<8xf32>
      %51 = vector.multi_reduction <add>, %50, %cst_27 [1] : vector<8x256xf32> to vector<8xf32>
      %52 = vector.shape_cast %51 : vector<8xf32> to vector<8x1xf32>
      %cst_28 = arith.constant 2.560000e+02 : f32
      %53 = vector.broadcast %cst_28 : f32 to vector<8x1xf32>
      %54 = arith.divf %52, %53 : vector<8x1xf32>
      %cst_29 = arith.constant 9.99999997E-7 : f32
      %55 = vector.broadcast %cst_29 : f32 to vector<8x1xf32>
      %56 = arith.addf %54, %55 : vector<8x1xf32>
      %57 = math.rsqrt %56 : vector<8x1xf32>
      %58 = vector.broadcast %57 : vector<8x1xf32> to vector<8x256xf32>
      %59 = arith.mulf %49, %58 : vector<8x256xf32>
      %c0_30 = arith.constant 0 : index
      %c0_31 = arith.constant 0 : index
      %60 = vector.load %arg3[%c0_30, %c0_31] : memref<1x256xf32, #tpu.memory_space<vmem>>, vector<1x256xf32>
      %61 = vector.broadcast %60 : vector<1x256xf32> to vector<8x256xf32>
      %62 = arith.mulf %59, %61 : vector<8x256xf32>
      %63 = arith.truncf %62 : vector<8x256xf32> to vector<8x256xbf16>
      %c0_32 = arith.constant 0 : index
      %c0_33 = arith.constant 0 : index
      %64 = vector.load %arg10[%c0_32, %c0_33] : memref<8x256xbf16, #tpu.memory_space<vmem>>, vector<8x256xbf16>
      tpu.vector_store %arg10[%c0_32, %c0_33], %63 {strides = array<i32>} : memref<8x256xbf16, #tpu.memory_space<vmem>>, vector<8x256xbf16>,
    } else {
    }
    %c0 = arith.constant 0 : index
    %c0_1 = arith.constant 0 : index
    %3 = vector.load %arg10[%c0, %c0_1] : memref<8x256xbf16, #tpu.memory_space<vmem>>, vector<8x256xbf16>
    %c0_2 = arith.constant 0 : index
    %c0_3 = arith.constant 0 : index
    %c0_4 = arith.constant 0 : index
    %4 = vector.load %arg4[%c0_2, %c0_3, %c0_4] : memref<1x256x384xbf16, #tpu.memory_space<vmem>>, vector<1x256x384xbf16>
    %5 = vector.shape_cast %4 : vector<1x256x384xbf16> to vector<256x384xbf16>
    %cst = arith.constant dense<0.000000e+00> : vector<8x384xf32>
    %6 = tpu.matmul %3, %5, %cst {dimension_numbers = #tpu.dot_dimension_numbers<[1], [0], [0], [1], [0, 0, 1, 1], [], []>} : vector<8x256xbf16>, vector<256x384xbf16>, vector<8x384xf32> -> vector<8x384xf32>
    %7 = vector.extract_strided_slice %6 {offsets = [0, 0], sizes = [8, 128], strides = [1, 1]} : vector<8x384xf32> to vector<8x128xf32>
    %8 = vector.extract_strided_slice %6 {offsets = [0, 128], sizes = [8, 128], strides = [1, 1]} : vector<8x384xf32> to vector<8x128xf32>
    %9 = vector.extract_strided_slice %6 {offsets = [0, 256], sizes = [8, 128], strides = [1, 1]} : vector<8x384xf32> to vector<8x128xf32>
    %c0_5 = arith.constant 0 : index
    %c0_6 = arith.constant 0 : index
    %10 = vector.load %arg6[%c0_5, %c0_6] : memref<8x128xf32, #tpu.memory_space<vmem>>, vector<8x128xf32>
    %c0_7 = arith.constant 0 : index
    %c0_8 = arith.constant 0 : index
    %11 = vector.load %arg7[%c0_7, %c0_8] : memref<8x128xf32, #tpu.memory_space<vmem>>, vector<8x128xf32>
    %12 = arith.mulf %7, %10 : vector<8x128xf32>
    %c64_i32 = arith.constant 64 : i32
    %13 = tpu.dynamic_rotate %7 by %c64_i32 dim 1 : vector<8x128xf32>, i32 -> vector<8x128xf32>
    %14 = arith.mulf %13, %11 : vector<8x128xf32>
    %15 = arith.addf %12, %14 : vector<8x128xf32>
    %16 = arith.mulf %8, %10 : vector<8x128xf32>
    %c64_i32_9 = arith.constant 64 : i32
    %17 = tpu.dynamic_rotate %8 by %c64_i32_9 dim 1 : vector<8x128xf32>, i32 -> vector<8x128xf32>
    %18 = arith.mulf %17, %11 : vector<8x128xf32>
    %19 = arith.addf %16, %18 : vector<8x128xf32>
    %20 = arith.truncf %15 : vector<8x128xf32> to vector<8x128xbf16>
    %21 = arith.truncf %19 : vector<8x128xf32> to vector<8x128xbf16>
    %cst_10 = arith.constant dense<0.000000e+00> : vector<8x8xf32>
    %22 = tpu.matmul %20, %21, %cst_10 {dimension_numbers = #tpu.dot_dimension_numbers<[1], [1], [0], [0], [0, 0, 1, 0], [], []>} : vector<8x128xbf16>, vector<8x128xbf16>, vector<8x8xf32> -> vector<8x8xf32>
    %c0_11 = arith.constant 0 : index
    %c0_12 = arith.constant 0 : index
    %23 = vector.load %arg8[%c0_11, %c0_12] : memref<8x8xf32, #tpu.memory_space<vmem>>, vector<8x8xf32>
    %24 = arith.addf %22, %23 : vector<8x8xf32>
    %cst_13 = arith.constant dense<0xFF800000> : vector<8xf32>
    %25 = vector.multi_reduction <maximumf>, %24, %cst_13 [1] : vector<8x8xf32> to vector<8xf32>
    %26 = vector.shape_cast %25 : vector<8xf32> to vector<8x1xf32>
    %27 = vector.broadcast %26 : vector<8x1xf32> to vector<8x8xf32>
    %28 = arith.subf %24, %27 : vector<8x8xf32>
    %29 = math.exp %28 : vector<8x8xf32>
    %cst_14 = arith.constant dense<0.000000e+00> : vector<8xf32>
    %30 = vector.multi_reduction <add>, %29, %cst_14 [1] : vector<8x8xf32> to vector<8xf32>
    %31 = vector.shape_cast %30 : vector<8xf32> to vector<8x1xf32>
    %32 = tpu.reciprocal %31 {approx = true} : vector<8x1xf32> -> vector<8x1xf32>
    %33 = vector.broadcast %32 : vector<8x1xf32> to vector<8x8xf32>
    %34 = arith.mulf %29, %33 : vector<8x8xf32>
    %35 = arith.truncf %34 : vector<8x8xf32> to vector<8x8xbf16>
    %36 = arith.truncf %9 : vector<8x128xf32> to vector<8x128xbf16>
    %cst_15 = arith.constant dense<0.000000e+00> : vector<8x128xf32>
    %37 = tpu.matmul %35, %36, %cst_15 {dimension_numbers = #tpu.dot_dimension_numbers<[1], [0], [0], [1], [0, 0, 1, 1], [], []>} : vector<8x8xbf16>, vector<8x128xbf16>, vector<8x128xf32> -> vector<8x128xf32>
    %38 = arith.truncf %37 : vector<8x128xf32> to vector<8x128xbf16>
    %c0_16 = arith.constant 0 : index
    %c0_17 = arith.constant 0 : index
    %c0_18 = arith.constant 0 : index
    %39 = vector.load %arg5[%c0_16, %c0_17, %c0_18] : memref<1x128x256xbf16, #tpu.memory_space<vmem>>, vector<1x128x256xbf16>
    %40 = vector.shape_cast %39 : vector<1x128x256xbf16> to vector<128x256xbf16>
    %cst_19 = arith.constant dense<0.000000e+00> : vector<8x256xf32>
    %41 = tpu.matmul %38, %40, %cst_19 {dimension_numbers = #tpu.dot_dimension_numbers<[1], [0], [0], [1], [0, 0, 1, 1], [], []>} : vector<8x128xbf16>, vector<128x256xbf16>, vector<8x256xf32> -> vector<8x256xf32>
    %c0_i32_20 = arith.constant 0 : i32
    %42 = arith.cmpi eq, %arg1, %c0_i32_20 : i32
    %43 = arith.extui %42 : i1 to i32
    %c0_i32_21 = arith.constant 0 : i32
    %44 = arith.cmpi ne, %43, %c0_i32_21 : i32
    scf.if %44 {
      %c0_24 = arith.constant 0 : index
      %c0_25 = arith.constant 0 : index
      %c0_26 = arith.constant 0 : index
      %48 = vector.load %arg2[%c0_24, %c0_25, %c0_26] : memref<1x8x256xf32, #tpu.memory_space<vmem>>, vector<1x8x256xf32>
      %49 = vector.shape_cast %48 : vector<1x8x256xf32> to vector<8x256xf32>
      %50 = arith.addf %49, %41 : vector<8x256xf32>
      %c0_27 = arith.constant 0 : index
      %c0_28 = arith.constant 0 : index
      %c0_29 = arith.constant 0 : index
      %51 = vector.load %arg9[%c0_27, %c0_28, %c0_29] : memref<1x8x256xf32, #tpu.memory_space<vmem>>, vector<1x8x256xf32>
      %52 = vector.shape_cast %51 : vector<1x8x256xf32> to vector<8x256xf32>
      %53 = vector.shape_cast %50 : vector<8x256xf32> to vector<1x8x256xf32>
      tpu.vector_store %arg9[%c0_27, %c0_28, %c0_29], %53 {strides = array<i32>} : memref<1x8x256xf32, #tpu.memory_space<vmem>>, vector<1x8x256xf32>,
    } else {
    }
    %c0_i32_22 = arith.constant 0 : i32
    %45 = arith.cmpi sgt, %arg1, %c0_i32_22 : i32
    %46 = arith.extui %45 : i1 to i32
    %c0_i32_23 = arith.constant 0 : i32
    %47 = arith.cmpi ne, %46, %c0_i32_23 : i32
    scf.if %47 {
      %c0_24 = arith.constant 0 : index
      %c0_25 = arith.constant 0 : index
      %c0_26 = arith.constant 0 : index
      %48 = vector.load %arg9[%c0_24, %c0_25, %c0_26] : memref<1x8x256xf32, #tpu.memory_space<vmem>>, vector<1x8x256xf32>
      %49 = vector.shape_cast %48 : vector<1x8x256xf32> to vector<8x256xf32>
      %50 = arith.addf %49, %41 : vector<8x256xf32>
      %c0_27 = arith.constant 0 : index
      %c0_28 = arith.constant 0 : index
      %c0_29 = arith.constant 0 : index
      %51 = vector.load %arg9[%c0_27, %c0_28, %c0_29] : memref<1x8x256xf32, #tpu.memory_space<vmem>>, vector<1x8x256xf32>
      %52 = vector.shape_cast %51 : vector<1x8x256xf32> to vector<8x256xf32>
      %53 = vector.shape_cast %50 : vector<8x256xf32> to vector<1x8x256xf32>
      tpu.vector_store %arg9[%c0_27, %c0_28, %c0_29], %53 {strides = array<i32>} : memref<1x8x256xf32, #tpu.memory_space<vmem>>, vector<1x8x256xf32>,
    } else {
    }
    return
  }
  func.func @transform_0(%arg0: i32, %arg1: i32) -> (i32, i32, i32) {
    %c0_i32 = arith.constant 0 : i32
    %c0_i32_0 = arith.constant 0 : i32
    %c0_i32_1 = arith.constant 0 : i32
    return %arg0, %c0_i32, %c0_i32_0 : i32, i32, i32
  }
  func.func @transform_1(%arg0: i32, %arg1: i32) -> (i32, i32) {
    %c0_i32 = arith.constant 0 : i32
    %c0_i32_0 = arith.constant 0 : i32
    %c0_i32_1 = arith.constant 0 : i32
    return %c0_i32, %c0_i32_0 : i32, i32
  }
  func.func @transform_2(%arg0: i32, %arg1: i32) -> (i32, i32, i32) {
    %c0_i32 = arith.constant 0 : i32
    %c0_i32_0 = arith.constant 0 : i32
    %c0_i32_1 = arith.constant 0 : i32
    return %arg1, %c0_i32, %c0_i32_0 : i32, i32, i32
  }
  func.func @transform_3(%arg0: i32, %arg1: i32) -> (i32, i32, i32) {
    %c0_i32 = arith.constant 0 : i32
    %c0_i32_0 = arith.constant 0 : i32
    %c0_i32_1 = arith.constant 0 : i32
    return %arg1, %c0_i32, %c0_i32_0 : i32, i32, i32
  }
  func.func @transform_4(%arg0: i32, %arg1: i32) -> (i32, i32) {
    %c0_i32 = arith.constant 0 : i32
    %c0_i32_0 = arith.constant 0 : i32
    %c0_i32_1 = arith.constant 0 : i32
    return %c0_i32, %c0_i32_0 : i32, i32
  }
  func.func @transform_5(%arg0: i32, %arg1: i32) -> (i32, i32) {
    %c0_i32 = arith.constant 0 : i32
    %c0_i32_0 = arith.constant 0 : i32
    %c0_i32_1 = arith.constant 0 : i32
    return %c0_i32, %c0_i32_0 : i32, i32
  }
  func.func @transform_6(%arg0: i32, %arg1: i32) -> (i32, i32) {
    %c0_i32 = arith.constant 0 : i32
    %c0_i32_0 = arith.constant 0 : i32
    %c0_i32_1 = arith.constant 0 : i32
    return %c0_i32, %c0_i32_0 : i32, i32
  }
  func.func @transform_7(%arg0: i32, %arg1: i32) -> (i32, i32, i32) {
    %c0_i32 = arith.constant 0 : i32
    %c0_i32_0 = arith.constant 0 : i32
    %c0_i32_1 = arith.constant 0 : i32
    return %arg0, %c0_i32, %c0_i32_0 : i32, i32, i32
  }
}

module attributes {stable_mosaic.version = 11 : i64} {
  func.func @lm_head_kernel(%arg0: i32, %arg1: memref<2x256xf32, #tpu.memory_space<vmem>>, %arg2: memref<1x256xf32, #tpu.memory_space<vmem>>, %arg3: memref<256x256xbf16, #tpu.memory_space<vmem>>, %arg4: memref<2x256xf32, #tpu.memory_space<vmem>>) attributes {dimension_semantics = [#tpu.dimension_semantics<parallel>], iteration_bounds = array<i64: 1>, scalar_prefetch = 0 : i64, scratch_operands = 0 : i64, tpu.core_type = #tpu.core_type<tc>, window_params = [{pipeline_mode = #tpu.pipeline_mode<synchronous>, transform_indices = @transform_0, window_bounds = array<i64: 2, 256>}, {pipeline_mode = #tpu.pipeline_mode<synchronous>, transform_indices = @transform_1, window_bounds = array<i64: 1, 256>}, {transform_indices = @transform_2, window_bounds = array<i64: 256, 256>}, {transform_indices = @transform_3, window_bounds = array<i64: 2, 256>}]} {
    %c0 = arith.constant 0 : index
    %c0_0 = arith.constant 0 : index
    %0 = vector.load %arg1[%c0, %c0_0] : memref<2x256xf32, #tpu.memory_space<vmem>>, vector<2x256xf32>
    %1 = arith.mulf %0, %0 : vector<2x256xf32>
    %cst = arith.constant dense<0.000000e+00> : vector<2xf32>
    %2 = vector.multi_reduction <add>, %1, %cst [1] : vector<2x256xf32> to vector<2xf32>
    %3 = vector.shape_cast %2 : vector<2xf32> to vector<2x1xf32>
    %cst_1 = arith.constant 2.560000e+02 : f32
    %4 = vector.broadcast %cst_1 : f32 to vector<2x1xf32>
    %5 = arith.divf %3, %4 : vector<2x1xf32>
    %cst_2 = arith.constant 9.99999997E-7 : f32
    %6 = vector.broadcast %cst_2 : f32 to vector<2x1xf32>
    %7 = arith.addf %5, %6 : vector<2x1xf32>
    %8 = math.rsqrt %7 : vector<2x1xf32>
    %9 = vector.broadcast %8 : vector<2x1xf32> to vector<2x256xf32>
    %10 = arith.mulf %0, %9 : vector<2x256xf32>
    %c0_3 = arith.constant 0 : index
    %c0_4 = arith.constant 0 : index
    %11 = vector.load %arg2[%c0_3, %c0_4] : memref<1x256xf32, #tpu.memory_space<vmem>>, vector<1x256xf32>
    %12 = vector.broadcast %11 : vector<1x256xf32> to vector<2x256xf32>
    %13 = arith.mulf %10, %12 : vector<2x256xf32>
    %14 = arith.truncf %13 : vector<2x256xf32> to vector<2x256xbf16>
    %c0_5 = arith.constant 0 : index
    %c0_6 = arith.constant 0 : index
    %15 = vector.load %arg3[%c0_5, %c0_6] : memref<256x256xbf16, #tpu.memory_space<vmem>>, vector<256x256xbf16>
    %cst_7 = arith.constant dense<0.000000e+00> : vector<2x256xf32>
    %16 = tpu.matmul %14, %15, %cst_7 {dimension_numbers = #tpu.dot_dimension_numbers<[1], [0], [0], [1], [0, 0, 1, 1], [], []>} : vector<2x256xbf16>, vector<256x256xbf16>, vector<2x256xf32> -> vector<2x256xf32>
    %c0_8 = arith.constant 0 : index
    %c0_9 = arith.constant 0 : index
    %17 = vector.load %arg4[%c0_8, %c0_9] : memref<2x256xf32, #tpu.memory_space<vmem>>, vector<2x256xf32>
    tpu.vector_store %arg4[%c0_8, %c0_9], %16 {strides = array<i32>} : memref<2x256xf32, #tpu.memory_space<vmem>>, vector<2x256xf32>,
    return
  }
  func.func @transform_0(%arg0: i32) -> (i32, i32) {
    %c0_i32 = arith.constant 0 : i32
    %c0_i32_0 = arith.constant 0 : i32
    %c0_i32_1 = arith.constant 0 : i32
    return %c0_i32, %c0_i32_0 : i32, i32
  }
  func.func @transform_1(%arg0: i32) -> (i32, i32) {
    %c0_i32 = arith.constant 0 : i32
    %c0_i32_0 = arith.constant 0 : i32
    %c0_i32_1 = arith.constant 0 : i32
    return %c0_i32, %c0_i32_0 : i32, i32
  }
  func.func @transform_2(%arg0: i32) -> (i32, i32) {
    %c0_i32 = arith.constant 0 : i32
    %c0_i32_0 = arith.constant 0 : i32
    return %c0_i32, %arg0 : i32, i32
  }
  func.func @transform_3(%arg0: i32) -> (i32, i32) {
    %c0_i32 = arith.constant 0 : i32
    %c0_i32_0 = arith.constant 0 : i32
    return %c0_i32, %arg0 : i32, i32
  }
}

</mosaic_0001>

<bundles_post_ra>
// kernel: qwen_forward.5
= control target key start
LH: loop header
LB: loop body
LE: loop exit
PB: predicated region body
PF: predicated region fallthrough
CT: control target
= control target key end

     0   :  { %v21_v1 = vlaneseq  ;;  %v450_v2 = vmov 1983009808   ;;  %vm28_vm0 = vcmask 1041408   ;;  %s603_s0 = inlined_call_operand.vmem [shape: f32[2,256], index: 0, kind: input, shape index: {}]   ;;  %s604_s1 = inlined_call_operand.vmem [shape: f32[1,256], index: 1, kind: input, shape index: {}]   ;;  %s605_s2 = inlined_call_operand.vmem [shape: bf16[256,256], index: 2, kind: input, shape index: {}]   ;;  %s606_s3 = inlined_call_operand.hbm [shape: f32[2,256], index: 3, kind: output, shape index: {}]  }
   0x1   :  { %v476_v0 = vld [vmem:[%s603_s0] sm:$0xf]  ;;  %v19_v3 = vunpack.c.l.s4 %v450_v2  ;;  %v376_v4 = vld [vmem:[%s605_s2 + $0x4] ss:$8 sps:$4 sm:$0xff]   ;;  %v379_v7 = vld [vmem:[%s605_s2 + $0x14] ss:$8 sps:$4 sm:$0xff]  }
   0x2   :  { %v378_v5 = vld [vmem:[%s605_s2] ss:$8 sps:$4 sm:$0xff]   ;;  %v484_v6 = vshrl.u32 %v21_v1, 7  ;;  %v16_v8 = vmul.f32 %v476_v0, %v476_v0  ;;  %273 = vmatprep.subr.bf16.mxu0 %v376_v4  ;;  %v381_v10 = vld [vmem:[%s605_s2 + $0x10] ss:$8 sps:$4 sm:$0xff]  }
   0x3   :  { %v20_v9 = vunpack.c.0.s8 %v19_v3  ;;  %274 = vmatpush1.bf16.msra.mxu0 %v378_v5  ;;  %v382_v12 = vld [vmem:[%s605_s2 + $0x24] ss:$8 sps:$4 sm:$0xff]   ;;  %v384_v14 = vld [vmem:[%s605_s2 + $0x20] ss:$8 sps:$4 sm:$0xff]   ;;  %v385_v17 = vld [vmem:[%s605_s2 + $0x34] ss:$8 sps:$4 sm:$0xff]  }
   0x4   :  { %275 = vmatprep.subr.bf16.mxu0 %v379_v7  ;;  %v387_v20 = vld [vmem:[%s605_s2 + $0x30] ss:$8 sps:$4 sm:$0xff]   ;;  %v388_v21 = vld [vmem:[%s605_s2 + $0x44] ss:$8 sps:$4 sm:$0xff]   ;;  %v390_v22 = vld [vmem:[%s605_s2 + $0x40] ss:$8 sps:$4 sm:$0xff]  }
   0x5   :  { %v495_v11 = vsub.s32 %v20_v9, %v484_v6  ;;  %v391_v23 = vld [vmem:[%s605_s2 + $0x54] ss:$8 sps:$4 sm:$0xff]  }
   0x7   :  { %v24_v13 = vrot.slane %v16_v8, %v495_v11  ;;  %276 = vmatpush1.bf16.msra.mxu0 %v381_v10 }
   0x8   :  { %277 = vmatprep.subr.bf16.mxu0 %v382_v12 }
   0x9   :  { %v25_v15 = vcombine.high %v24_v13, %v24_v13  ;;  %v29_v16 = vsel %vm28_vm0, %v24_v13, 0.0 }
   0xb   :  { %v30_v18 = vsel %vm28_vm0, %v25_v15, 0.0  ;;  %278 = vmatpush1.bf16.msra.mxu0 %v384_v14 }
   0xc   :  { %v31_v19 = vadd.f32 %v30_v18, %v29_v16  ;;  %279 = vmatprep.subr.bf16.mxu0 %v385_v17 }
   0xe   :  { %32 = vadd.xlane.f32.xlu0 %v31_v19 }
   0xf   :  { %280 = vmatpush1.bf16.msra.mxu0 %v387_v20 }
  0x10   :  { %281 = vmatprep.subr.bf16.mxu0 %v388_v21 }
  0x11   :  { %8 = vsyncpa [#allocation3], 0  ;;  %v393_v24 = vld [vmem:[%s605_s2 + $0x50] ss:$8 sps:$4 sm:$0xff]   ;;  %v394_v25 = vld [vmem:[%s605_s2 + $0x64] ss:$8 sps:$4 sm:$0xff]  }
  0x12   :  { %v396_v26 = vld [vmem:[%s605_s2 + $0x60] ss:$8 sps:$4 sm:$0xff]   ;;  %v397_v27 = vld [vmem:[%s605_s2 + $0x74] ss:$8 sps:$4 sm:$0xff]   ;;  %v399_v28 = vld [vmem:[%s605_s2 + $0x70] ss:$8 sps:$4 sm:$0xff]  }
  0x13   :  { %282 = vmatpush1.bf16.msra.mxu0 %v390_v22  ;;  %v400_v29 = vld [vmem:[%s605_s2 + $0x84] ss:$8 sps:$4 sm:$0xff]   ;;  %v402_v30 = vld [vmem:[%s605_s2 + $0x80] ss:$8 sps:$4 sm:$0xff]   ;;  %v403_v31 = vld [vmem:[%s605_s2 + $0x94] ss:$8 sps:$4 sm:$0xff]  }
  0x14   :  { %283 = vmatprep.subr.bf16.mxu0 %v391_v23  ;;  %v405_v32 = vld [vmem:[%s605_s2 + $0x90] ss:$8 sps:$4 sm:$0xff]   ;;  %v406_v33 = vld [vmem:[%s605_s2 + $0xa4] ss:$8 sps:$4 sm:$0xff]   ;;  %v408_v34 = vld [vmem:[%s605_s2 + $0xa0] ss:$8 sps:$4 sm:$0xff]  }
  0x15   :  { %v409_v35 = vld [vmem:[%s605_s2 + $0xb4] ss:$8 sps:$4 sm:$0xff]   ;;  %v411_v36 = vld [vmem:[%s605_s2 + $0xb0] ss:$8 sps:$4 sm:$0xff]   ;;  %v412_v37 = vld [vmem:[%s605_s2 + $0xc4] ss:$8 sps:$4 sm:$0xff]  }
  0x16   :  { %v414_v38 = vld [vmem:[%s605_s2 + $0xc0] ss:$8 sps:$4 sm:$0xff]   ;;  %v415_v39 = vld [vmem:[%s605_s2 + $0xd4] ss:$8 sps:$4 sm:$0xff]   ;;  %v417_v40 = vld [vmem:[%s605_s2 + $0xd0] ss:$8 sps:$4 sm:$0xff]  }
  0x17   :  { %284 = vmatpush1.bf16.msra.mxu0 %v393_v24  ;;  %v418_v41 = vld [vmem:[%s605_s2 + $0xe4] ss:$8 sps:$4 sm:$0xff]   ;;  %v420_v42 = vld [vmem:[%s605_s2 + $0xe0] ss:$8 sps:$4 sm:$0xff]   ;;  %v421_v43 = vld [vmem:[%s605_s2 + $0xf4] ss:$8 sps:$4 sm:$0xff]  }
  0x18   :  { %285 = vmatprep.subr.bf16.mxu0 %v394_v25  ;;  %v423_v44 = vld [vmem:[%s605_s2 + $0xf0] ss:$8 sps:$4 sm:$0xff]   ;;  %v451_v48 = vmov 269488144   ;;  %v52_v50 = vsub.s32 0, %v484_v6  ;;  %v56_v51 = vsub.s32 1, %v484_v6 }
  0x19   :  { %v40_v49 = vunpack.c.l.s4 %v451_v48  ;;  %v48_v52 = vld [vmem:[%s604_s1] sm:$0x3]  ;;  %s452_s1 = smov [#allocation2]  }
  0x1a   :  { %v53_v54 = vrot.slane %v48_v52, %v52_v50  ;;  %v57_v55 = vrot.slane %v48_v52, %v56_v51  ;;  %s332_s2 = sshll.u32 %s452_s1, 4  ;;  %s333_s2 = int_to_ptr.vmem [resolvable:$true] %s332_s2 }
  0x1b   :  { %286 = vmatpush1.bf16.msra.mxu0 %v396_v26  ;;  %v41_v53 = vunpack.c.0.s8 %v40_v49  ;;  %s426_s23 = scalar_lea.vmem %s333_s2, 64  ;;  %p431_p1 = scmp.lt.s32.totalorder %s333_s2, %s333_s2 }
  0x1c   :  { %287 = vmatprep.subr.bf16.mxu0 %v397_v27  ;;  %v58_v57 = vcombine.low %v53_v54, %v57_v55  ;;  %p427_p0 = scmp.ne.s32.totalorder %s333_s2, %s426_s23  ;;  %p432_p2 = scmp.lt.s32.totalorder %s426_s23, %s426_s23 }
  0x1d   :  { %v44_v56 = vsub.s32 %v41_v53, %v484_v6 }
  0x1e   :  { %v65_v60 = vrot.slane %v58_v57, %v495_v11  ;;  %p433_p3 = por %p432_p2, %p431_p1 }
  0x1f   :  { %288 = vmatpush1.bf16.msra.mxu0 %v399_v28 }
  0x20   :  { %289 = vmatprep.subr.bf16.mxu0 %v400_v29  ;;  %p434_p4 = pnand %p433_p3, %p427_p0 }
  0x23   :  { %290 = vmatpush1.bf16.msra.mxu0 %v402_v30 }
  0x24   :  { %291 = vmatprep.subr.bf16.mxu0 %v403_v31 }
  0x27   :  { %292 = vmatpush1.bf16.msra.mxu0 %v405_v32 }
  0x28   :  { %293 = vmatprep.subr.bf16.mxu0 %v406_v33 }
  0x2b   :  { %294 = vmatpush1.bf16.msra.mxu0 %v408_v34 }
  0x2c   :  { %295 = vmatprep.subr.bf16.mxu0 %v409_v35 }
  0x2f   :  { %296 = vmatpush1.bf16.msra.mxu0 %v411_v36 }
  0x30   :  { %297 = vmatprep.subr.bf16.mxu0 %v412_v37 }
  0x33   :  { %298 = vmatpush1.bf16.msra.mxu0 %v414_v38 }
  0x34   :  { %299 = vmatprep.subr.bf16.mxu0 %v415_v39 }
  0x37   :  { %300 = vmatpush1.bf16.msra.mxu0 %v417_v40 }
  0x38   :  { %301 = vmatprep.subr.bf16.mxu0 %v418_v41 }
  0x3b   :  { %302 = vmatpush1.bf16.msra.mxu0 %v420_v42 }
  0x3c   :  { %303 = vmatprep.subr.bf16.mxu0 %v421_v43 }
  0x3f   :  { %304 = vmatpush1.bf16.msra.mxu0 %v423_v44 }
  0x9b   :  { %v33_v45 = vpop.xlane.xlu0 %32 }
  0x9c   :  { %v35_v46 = vmul.f32 0.00390625, %v33_v45 }
  0x9e   :  { %v36_v47 = vadd.f32 1e-06, %v35_v46 }
  0xa0   :  { %424 = vrsqrt.f32 %v36_v47 }
  0xaa   :  { %v425_v58 = vpop.eup %424 }
  0xab   :  { %v45_v59 = vrot.slane %v425_v58, %v44_v56 }
  0xad   :  { %v47_v61 = vmul.f32 %v45_v59, %v476_v0 }
  0xaf   :  { %v67_v62 = vmul.f32 %v65_v60, %v47_v61 }
  0xb1   :  { %v75_v63 = vrot.slane %v67_v62, %v495_v11 }
  0xb3   :  { %v76_v1 = vcombine.high %v75_v63, %v75_v63  ;;  %v79_v3 = vpack.c.bf16 %v75_v63, %v75_v63 }
  0xb5   :  { %v80_v2 = vpack.c.bf16 %v76_v1, %v76_v1 }
  0xb7   :  { %305 = vmatprep.mubr.bf16.mxu0 %v80_v2 }
  0xb8   :  { %306 = vmatmul.mubr.bf16.vlgmr.msra.gmra.mrb[0].mxu0 %v79_v3 }
 0x18b   :  { %v307_v4 = vpop.f32.mrb[0].mxu0 }
 0x18c   :  { %v309_v5 = vpop.f32.mrb[1].mxu0 }
 0x18d   :  { %v316_v6 = vcombine.low %v307_v4, %v309_v5  ;;  %v311_v7 = vpop.f32.mrb[2].mxu0 }
 0x18e   :  { %v312_v8 = vpop.f32.mrb[3].mxu0 }
 0x18f   :  { %372 = vst.sshfl [vmem:[#allocation2] sm:$0x33 pattern:$0x76325410] %v316_v6 }
 0x190   :  { %437 = shalt.err (!%p434_p4)
}
 0x191   :  { %s438_s26 = scalar_lea.hbm %s606_s3, 64 }
 0x192   :  { %p439_p5 = scmp.ne.s32.totalorder %s606_s3, %s438_s26  ;;  %p442_p6 = scmp.lt.u32.totalorder %s438_s26, %s606_s3 }
 0x194   :  { %p444_p7 = pnand %p442_p6, %p439_p5 }
 0x196   :  { %447 = shalt.err (!%p444_p7)
}
 0x197   :  { %335 = dma.vmem_to_hbm [thread:$0]  %s333_s2, 64, %s606_s3, [#allocation3]  }
 0x198   :  { %448 = dma.done.wait [#allocation3], 64  }
 0x199   :  { %449 = vsyncadd [#allocation3], 4294967232 }
 0x19a   :  { %339 = vsyncpa [#allocation3], 1 }

// kernel: qwen_forward.4
= control target key start
LH: loop header
LB: loop body
LE: loop exit
PB: predicated region body
PF: predicated region fallthrough
CT: control target
= control target key end

     0   :  { %9 = vsyncpa [#allocation4], 0  ;;  %s1916_s0 = inlined_call_operand.vmem [shape: f32[2,8,256], index: 0, kind: input, shape index: {}]   ;;  %s1917_s1 = inlined_call_operand.vmem [shape: f32[1,256], index: 1, kind: input, shape index: {}]   ;;  %s1918_s2 = inlined_call_operand.vmem [shape: bf16[2,256,512], index: 2, kind: input, shape index: {}]   ;;  %s1919_s3 = inlined_call_operand.hbm [shape: bf16[512,256], index: 3, kind: input, shape index: {}]   ;;  %s1920_s4 = inlined_call_operand.vmem [shape: f32[2,8,256], index: 4, kind: output, shape index: {}]  }
   0x1   :  { %11 = vsyncpa [#allocation4 + $0x1], 0  ;;  %s1641_s15 = smov 0   ;;  %s1643_s16 = smov 0  }
   0x2   :  { %s1645_s17 = smov 0   ;;  %s1647_s18 = smov 0  }
   0x3   :  { %s1649_s19 = smov 0   ;;  %s1651_s20 = smov 0  }
   0x4   :  { %s1653_s21 = smov 0   ;;  %s1655_s22 = smov 0  }
   0x5 LB: > { %s1158_s23 = sadd.s32 4294967295, %s1611_s22   ;;  %s26_s24 = sadd.s32 1, %s1603_s20  ;;  %s1611_s22 = sphi %s1655_s22, %s17_s22   ;;  %s1607_s21 = sphi %s1653_s21, %s1930_s21   ;;  %s1603_s20 = sphi %s1651_s20, %s1929_s20   ;;  %s1599_s19 = sphi %s1649_s19, %s1928_s19   ;;  %s1595_s18 = sphi %s1647_s18, %s1927_s18   ;;  %s1591_s17 = sphi %s1645_s17, %s1926_s17   ;;  %s1587_s16 = sphi %s1643_s16, %s1925_s16   ;;  %s1583_s15 = sphi %s1641_s15, %s1924_s15  }
   0x6   : > { %p27_p0 = scmp.ge.s32.totalorder %s26_s24, 2  ;;  %s29_s25 = sadd.s32 1, %s1607_s21 }
   0x7   : > { %s109_s26 = sadd.s32 1, %s1591_s17  ;;  %p116_p1 = scmp.ne.s32.totalorder %s1591_s17, %s1587_s16 }
   0x8   : > { %s1932_s24 = smov (%p27_p0, %s26_s24), 0  ;;  %s1934_s25 = smov (!%p27_p0, %s29_s25), %s1607_s21 }
   0x9   : > { %s106_s27 = ssub.s32 %s1603_s20, %s1932_s24  ;;  %p117_p2 = scmp.eq.s32.totalorder %s1611_s22, 0 }
   0xa   : > { %p31_p3 = scmp.ge.s32.totalorder %s1934_s25, 2  ;;  %p107_p4 = scmp.eq.s32.totalorder %s106_s27, 0 }
   0xb   : > { %p1691_p5 = por %p117_p2, %p116_p1  ;;  %p122_p6 = scmp.ne.s32.totalorder %s1587_s16, %s1583_s15 }
   0xc   : > { %s1936_s25 = smov (%p31_p3, %s1934_s25), 0  ;;  %p123_p7 = scmp.eq.s32.totalorder %s1158_s23, 0 }
   0xd   : > { %s1699_s29 = scalar_select %p107_p4, %s1591_s17, %s109_s26  }
   0xe   : > { %p1292_p8 = scmp.lt.s32.totalorder %s1611_s22, 4  ;;  %s191_s30 = sand.u32 1, %s1591_s17  }
   0xf   : > { %p1703_p9 = por %p123_p7, %p122_p6  ;;  %s1162_s6 = sshll.u32 %s191_s30, 8 }
  0x10   : > { %s1281_s7 = sshll.u32 %s1603_s20, 12  ;;  %s195_s11 = scalar_lea.vmem [#allocation3], %s1162_s6 }
  0x11   : > { %s1711_s10 = scalar_lea.hbm %s1919_s3, %s1281_s7  ;;  %s203_s12 = sshll.u32 %s195_s11, 4  ;;  %s1719_s12 = int_to_ptr.vmem [resolvable:$true] %s203_s12 }
  0x12   : > { %p1715_p10 = pnand %p1292_p8, %p1691_p5  ;;  %s1721_s14 = scalar_lea.sflag [#allocation4], %s191_s30 }
  0x13   : > { %s1515_s15 = scalar_lea.hbm %s1711_s10, 4096  ;;  %s1520_s27 = scalar_lea.hbm %s1919_s3, 8192 }
  0x14   : > { %p1516_p11 = scmp.ne.s32.totalorder %s1711_s10, %s1515_s15  ;;  %p1517_p12 = pneg %p1715_p10 }
  0x15   : > { %p1521_p1 = scmp.lt.u32.totalorder %s1711_s10, %s1919_s3  ;;  %p1522_p2 = scmp.lt.u32.totalorder %s1520_s27, %s1515_s15 }
  0x16   : > { %p1518_p13 = pnand %p1517_p12, %p1516_p11  ;;  %p1524_p4 = scmp.lt.u32.totalorder %s1515_s15, %s1711_s10 }
  0x17   : > { %p1523_p3 = por %p1522_p2, %p1521_p1 }
  0x18   : > { %p1519_p0 = pneg %p1518_p13 }
  0x19   : > { %p1525_p5 = por %p1524_p4, %p1523_p3 }
  0x1b   : > { %p1526_p6 = pnand %p1525_p5, %p1519_p0 }
  0x1d   : > { %1529 = shalt.err (!%p1526_p6)
}
  0x1e   : > { %s1530_s30 = scalar_lea.vmem %s1719_s12, 4096  ;;  %s1613_s7 = smov [#allocation3]  }
  0x1f   : > { %p1531_p7 = scmp.ne.s32.totalorder %s1719_s12, %s1530_s30  ;;  %s1535_s8 = sshll.u32 %s1613_s7, 4  ;;  %s1536_s8 = int_to_ptr.vmem [resolvable:$false] %s1535_s8 }
  0x20   : > { %s1537_s9 = scalar_lea.vmem %s1536_s8, 8192  ;;  %p1538_p13 = scmp.lt.s32.totalorder %s1719_s12, %s1536_s8 }
  0x21   : > { %p1533_p8 = pnand %p1531_p7, %p1517_p12  ;;  %p1539_p1 = scmp.lt.s32.totalorder %s1537_s9, %s1530_s30 }
  0x23   : > { %p1534_p11 = pneg %p1533_p8  ;;  %p1540_p2 = por %p1539_p1, %p1538_p13 }
  0x25   : > { %p1541_p3 = pnand %p1540_p2, %p1534_p11 }
  0x27   : > { %1544 = shalt.err (!%p1541_p3)
}
  0x28   : > { %s1614_s11 = smov 128   ;;  %s1615_s15 = smov 8  }
  0x29   : > { %1291 = dma.hbm_to_vmem [thread:$0]  (!%p1715_p10), %s1711_s10, 4096, %s1719_s12, %s1721_s14, %s1614_s11, %s1614_s11, %s1615_s15  }
  0x2a   : > { %p1166_p12 = scmp.ge.s32.totalorder %s1611_s22, 1  ;;  %p211_p0 = scmp.lt.s32.totalorder %s1611_s22, 5 }
  0x2c   : > { %p212_p4 = pnand %p1166_p12, %p211_p0 }
  0x2d   : > { %s217_s23 = sand.u32 (!%p212_p4), 1, %s1587_s16  }
  0x2e   : > { %215 = sbr.rel (%p212_p4) target bundleno = 766 (0x2fe), region = 36  ;;  %s1167_s26 = sshll.u32 (!%p212_p4), %s217_s23, 8 }
  0x2f   : > { %s218_s27 = scalar_lea.sflag (!%p212_p4), [#allocation4], %s217_s23  ;;  %s1752_s28 = scalar_lea.vmem (!%p212_p4), [#allocation3], %s1167_s26 }
  0x35   : > { %1578 = dma.done.wait (%p1703_p9), %s218_s27, 4096  }
  0x36   : > { %1580 = vsyncadd (%p1703_p9), %s218_s27, 4294963200  ;;  %p256_p10 = scmp.lt.s32.totalorder %s1599_s19, 1  ;;  %p261_p5 = scmp.lt.s32.totalorder %s1595_s18, 1 }
  0x37   : > { %p1174_p9 = scmp.ne.s32.totalorder %s1595_s18, 0 }
  0x38   : > { %s1938_s19 = smov (!%p256_p10, %s1599_s19), 1  ;;  %v291_v7 = vlaneseq (!%p1174_p9)  ;;  %v289_v12 = vld [vmem:[%s1917_s1] sm:$0x3] (!%p1174_p9) }
  0x39   : > { %s262_s10 = scalar_select %p261_p5, %s1595_s18, 1 }
  0x3a   : > { %s1282_s12 = sshll.u32 %s1938_s19, 4  ;;  %275 = sbr.rel (%p1174_p9) target bundleno = 229 (0xe5), region = 44  ;;  %v292_v9 = vshrl.u32 (!%p1174_p9), %v291_v7, 7 }
  0x3b   : > { %s1765_s6 = scalar_lea.vmem %s1916_s0, %s1282_s12  ;;  %s1283_s30 = sshll.u32 %s262_s10, 9 }
  0x3c   : > { %s1770_s5 = scalar_lea.vmem %s1918_s2, %s1283_s30  ;;  %s1775_s15 = scalar_lea.vmem %s1920_s4, %s1282_s12  ;;  %v276_v0 = vld [vmem:[%s1765_s6] sm:$0xff] (!%p1174_p9)  ;;  %v277_v1 = vld [vmem:[%s1765_s6 + $0x8] sm:$0xff] (!%p1174_p9)  ;;  %v293_v10 = vsub.s32 (!%p1174_p9), 0, %v292_v9  ;;  %v297_v11 = vsub.s32 (!%p1174_p9), 1, %v292_v9 }
  0x3d   : > { %v278_v2 = vmul.f32 (!%p1174_p9), %v276_v0, %v276_v0  ;;  %v279_v3 = vmul.f32 (!%p1174_p9), %v277_v1, %v277_v1 }
  0x3e   : > { %v294_v13 = vrot.slane (!%p1174_p9), %v289_v12, %v293_v10  ;;  %v298_v14 = vrot.slane (!%p1174_p9), %v289_v12, %v297_v11 }
  0x3f   : > { %v280_v4 = vadd.f32 (!%p1174_p9), %v279_v3, %v278_v2 }
  0x41   : > { %281 = vadd.xlane.f32.xlu0 %v280_v4 }
  0xce   : > { %v282_v5 = vpop.xlane.xlu0 %281 }
  0xcf   : > { %v284_v6 = vmul.f32 0.00390625, %v282_v5 }
  0xd1   : > { %v285_v8 = vadd.f32 1e-06, %v284_v6 }
  0xd3   : > { %1359 = vrsqrt.f32 %v285_v8 }
  0xdd   : > { %v1360_v15 = vpop.eup %1359 }
  0xde   : > { %v287_v16 = vmul.f32 %v1360_v15, %v276_v0  ;;  %v288_v17 = vmul.f32 %v1360_v15, %v277_v1 }
  0xe0   : > { %v301_v18 = vmul.f32 %v294_v13, %v287_v16  ;;  %v302_v19 = vmul.f32 %v298_v14, %v288_v17 }
  0xe2   : > { %v1285_v20 = vpack.c.bf16 %v302_v19, %v301_v18 }
  0xe4   : > { %311 = vst [vmem:[#allocation2] sm:$0xff] %v1285_v20 }
  0xe5 PF: > { %v1361_v21 = vld [vmem:[%s1770_s5 + $0x4] ss:$16 sps:$4 sm:$0xff]   ;;  %v1363_v22 = vld [vmem:[%s1770_s5] ss:$16 sps:$4 sm:$0xff]   ;;  %v1382_v28 = vld [vmem:[%s1770_s5 + $0xc] ss:$16 sps:$4 sm:$0xff]  }
  0xe6   : > { %704 = vmatprep.subr.bf16.mxu0 %v1361_v21  ;;  %v1364_v23 = vld [vmem:[%s1770_s5 + $0x24] ss:$16 sps:$4 sm:$0xff]   ;;  %v1366_v24 = vld [vmem:[%s1770_s5 + $0x20] ss:$16 sps:$4 sm:$0xff]   ;;  %v1384_v29 = vld [vmem:[%s1770_s5 + $0x8] ss:$16 sps:$4 sm:$0xff]   ;;  %745 = vmatprep.subr.bf16.mxu1 %v1382_v28 }
  0xe7   : > { %705 = vmatpush1.bf16.msra.mxu0 %v1363_v22  ;;  %v1367_v25 = vld [vmem:[%s1770_s5 + $0x44] ss:$16 sps:$4 sm:$0xff]   ;;  %v1369_v26 = vld [vmem:[%s1770_s5 + $0x40] ss:$16 sps:$4 sm:$0xff]   ;;  %v1388_v32 = vld [vmem:[%s1770_s5 + $0x2c] ss:$16 sps:$4 sm:$0xff]   ;;  %746 = vmatpush1.bf16.msra.mxu1 %v1384_v29 }
  0xe8   : > { %706 = vmatprep.subr.bf16.mxu0 %v1364_v23  ;;  %v1370_v27 = vld [vmem:[%s1770_s5 + $0x64] ss:$16 sps:$4 sm:$0xff]   ;;  %v1372_v30 = vld [vmem:[%s1770_s5 + $0x60] ss:$16 sps:$4 sm:$0xff]   ;;  %v1390_v33 = vld [vmem:[%s1770_s5 + $0x28] ss:$16 sps:$4 sm:$0xff]   ;;  %747 = vmatprep.subr.bf16.mxu1 %v1388_v32 }
  0xe9   : > { %v1373_v31 = vld [vmem:[%s1770_s5 + $0x84] ss:$16 sps:$4 sm:$0xff]   ;;  %v1375_v34 = vld [vmem:[%s1770_s5 + $0x80] ss:$16 sps:$4 sm:$0xff]   ;;  %v1394_v35 = vld [vmem:[%s1770_s5 + $0x4c] ss:$16 sps:$4 sm:$0xff]  }
  0xea   : > { %v1376_v36 = vld [vmem:[%s1770_s5 + $0xa4] ss:$16 sps:$4 sm:$0xff]   ;;  %v1396_v37 = vld [vmem:[%s1770_s5 + $0x48] ss:$16 sps:$4 sm:$0xff]   ;;  %v1400_v38 = vld [vmem:[%s1770_s5 + $0x6c] ss:$16 sps:$4 sm:$0xff]  }
  0xeb   : > { %707 = vmatpush1.bf16.msra.mxu0 %v1366_v24  ;;  %748 = vmatpush1.bf16.msra.mxu1 %v1390_v33  ;;  %v1378_v39 = vld [vmem:[%s1770_s5 + $0xa0] ss:$16 sps:$4 sm:$0xff]   ;;  %v1379_v40 = vld [vmem:[%s1770_s5 + $0xc4] ss:$16 sps:$4 sm:$0xff]   ;;  %v1402_v41 = vld [vmem:[%s1770_s5 + $0x68] ss:$16 sps:$4 sm:$0xff]  }
  0xec   : > { %708 = vmatprep.subr.bf16.mxu0 %v1367_v25  ;;  %749 = vmatprep.subr.bf16.mxu1 %v1394_v35  ;;  %v1406_v42 = vld [vmem:[%s1770_s5 + $0x8c] ss:$16 sps:$4 sm:$0xff]   ;;  %v1381_v43 = vld [vmem:[%s1770_s5 + $0xc0] ss:$16 sps:$4 sm:$0xff]   ;;  %v1385_v44 = vld [vmem:[%s1770_s5 + $0xe4] ss:$16 sps:$4 sm:$0xff]  }
  0xed   : > { %v1408_v45 = vld [vmem:[%s1770_s5 + $0x88] ss:$16 sps:$4 sm:$0xff]   ;;  %v1412_v46 = vld [vmem:[%s1770_s5 + $0xac] ss:$16 sps:$4 sm:$0xff]   ;;  %v1387_v47 = vld [vmem:[%s1770_s5 + $0xe0] ss:$16 sps:$4 sm:$0xff]  }
  0xee   : > { %v1391_v48 = vld [vmem:[%s1770_s5 + $0x104] ss:$16 sps:$4 sm:$0xff]   ;;  %v1414_v49 = vld [vmem:[%s1770_s5 + $0xa8] ss:$16 sps:$4 sm:$0xff]   ;;  %v1418_v50 = vld [vmem:[%s1770_s5 + $0xcc] ss:$16 sps:$4 sm:$0xff]  }
  0xef   : > { %709 = vmatpush1.bf16.msra.mxu0 %v1369_v26  ;;  %750 = vmatpush1.bf16.msra.mxu1 %v1396_v37  ;;  %v1393_v51 = vld [vmem:[%s1770_s5 + $0x100] ss:$16 sps:$4 sm:$0xff]   ;;  %v1397_v52 = vld [vmem:[%s1770_s5 + $0x124] ss:$16 sps:$4 sm:$0xff]   ;;  %v1420_v53 = vld [vmem:[%s1770_s5 + $0xc8] ss:$16 sps:$4 sm:$0xff]  }
  0xf0   : > { %710 = vmatprep.subr.bf16.mxu0 %v1370_v27  ;;  %751 = vmatprep.subr.bf16.mxu1 %v1400_v38  ;;  %v1424_v54 = vld [vmem:[%s1770_s5 + $0xec] ss:$16 sps:$4 sm:$0xff]   ;;  %v312_v55 = vld [vmem:[#allocation2] sm:$0xff]  ;;  %v1426_v59 = vld [vmem:[%s1770_s5 + $0xe8] ss:$16 sps:$4 sm:$0xff]  }
  0xf1   : > { %v1399_v56 = vld [vmem:[%s1770_s5 + $0x120] ss:$16 sps:$4 sm:$0xff]   ;;  %v1177_v57 = vcombine.high %v312_v55, %v312_v55  ;;  %v1403_v58 = vld [vmem:[%s1770_s5 + $0x144] ss:$16 sps:$4 sm:$0xff]   ;;  %v1430_v60 = vld [vmem:[%s1770_s5 + $0x10c] ss:$16 sps:$4 sm:$0xff]   ;;  %v1176_v20 = vcombine.low %v312_v55, %v312_v55 }
  0xf2   : > { %v1405_v61 = vld [vmem:[%s1770_s5 + $0x140] ss:$16 sps:$4 sm:$0xff]   ;;  %v1409_v62 = vld [vmem:[%s1770_s5 + $0x164] ss:$16 sps:$4 sm:$0xff]   ;;  %v1432_v63 = vld [vmem:[%s1770_s5 + $0x108] ss:$16 sps:$4 sm:$0xff]  }
  0xf3   : > { %711 = vmatpush1.bf16.msra.mxu0 %v1372_v30  ;;  %752 = vmatpush1.bf16.msra.mxu1 %v1402_v41  ;;  %v1436_v0 = vld [vmem:[%s1770_s5 + $0x12c] ss:$16 sps:$4 sm:$0xff]   ;;  %v1411_v1 = vld [vmem:[%s1770_s5 + $0x160] ss:$16 sps:$4 sm:$0xff]   ;;  %v1415_v2 = vld [vmem:[%s1770_s5 + $0x184] ss:$16 sps:$4 sm:$0xff]  }
  0xf4   : > { %712 = vmatprep.subr.bf16.mxu0 %v1373_v31  ;;  %753 = vmatprep.subr.bf16.mxu1 %v1406_v42  ;;  %v1438_v3 = vld [vmem:[%s1770_s5 + $0x128] ss:$16 sps:$4 sm:$0xff]   ;;  %v1441_v4 = vld [vmem:[%s1770_s5 + $0x14c] ss:$16 sps:$4 sm:$0xff]   ;;  %v1417_v5 = vld [vmem:[%s1770_s5 + $0x180] ss:$16 sps:$4 sm:$0xff]  }
  0xf5   : > { %736 = vmatprep.mubr.bf16.mxu0 %v1177_v57  ;;  %777 = vmatprep.mubr.bf16.mxu1 %v1177_v57  ;;  %v1421_v6 = vld [vmem:[%s1770_s5 + $0x1a4] ss:$16 sps:$4 sm:$0xff]   ;;  %v1443_v7 = vld [vmem:[%s1770_s5 + $0x148] ss:$16 sps:$4 sm:$0xff]   ;;  %v1444_v8 = vld [vmem:[%s1770_s5 + $0x16c] ss:$16 sps:$4 sm:$0xff]  }
  0xf6   : > { %v1423_v9 = vld [vmem:[%s1770_s5 + $0x1a0] ss:$16 sps:$4 sm:$0xff]   ;;  %v1427_v10 = vld [vmem:[%s1770_s5 + $0x1c4] ss:$16 sps:$4 sm:$0xff]   ;;  %v1446_v12 = vld [vmem:[%s1770_s5 + $0x168] ss:$16 sps:$4 sm:$0xff]  }
  0xf7   : > { %713 = vmatpush1.bf16.msra.mxu0 %v1375_v34  ;;  %754 = vmatpush1.bf16.msra.mxu1 %v1408_v45  ;;  %v1429_v11 = vld [vmem:[%s1770_s5 + $0x1c0] ss:$16 sps:$4 sm:$0xff]   ;;  %v1447_v13 = vld [vmem:[%s1770_s5 + $0x18c] ss:$16 sps:$4 sm:$0xff]   ;;  %v1433_v14 = vld [vmem:[%s1770_s5 + $0x1e4] ss:$16 sps:$4 sm:$0xff]  }
  0xf8   : > { %714 = vmatprep.subr.bf16.mxu0 %v1376_v36  ;;  %755 = vmatprep.subr.bf16.mxu1 %v1412_v46  ;;  %v1449_v15 = vld [vmem:[%s1770_s5 + $0x188] ss:$16 sps:$4 sm:$0xff]   ;;  %v1450_v16 = vld [vmem:[%s1770_s5 + $0x1ac] ss:$16 sps:$4 sm:$0xff]   ;;  %v1435_v17 = vld [vmem:[%s1770_s5 + $0x1e0] ss:$16 sps:$4 sm:$0xff]  }
  0xf9   : > { %v1461_v18 = vld [vmem:[%s1752_s28 + $0x4] ss:$8 sps:$4 sm:$0xff]   ;;  %v1452_v19 = vld [vmem:[%s1770_s5 + $0x1a8] ss:$16 sps:$4 sm:$0xff]   ;;  %v1464_v23 = vld [vmem:[%s1752_s28 + $0x14] ss:$8 sps:$4 sm:$0xff]  }
  0xfa   : > { %v1453_v21 = vld [vmem:[%s1770_s5 + $0x1cc] ss:$16 sps:$4 sm:$0xff]   ;;  %v1459_v22 = vld [vmem:[%s1752_s28] ss:$8 sps:$4 sm:$0xff]   ;;  %v1462_v26 = vld [vmem:[%s1752_s28 + $0x10] ss:$8 sps:$4 sm:$0xff]  }
  0xfb   : > { %715 = vmatpush1.bf16.msra.mxu0 %v1378_v39  ;;  %756 = vmatpush1.bf16.msra.mxu1 %v1414_v49  ;;  %v1455_v24 = vld [vmem:[%s1770_s5 + $0x1c8] ss:$16 sps:$4 sm:$0xff]   ;;  %v1456_v25 = vld [vmem:[%s1770_s5 + $0x1ec] ss:$16 sps:$4 sm:$0xff]  }
  0xfc   : > { %716 = vmatprep.subr.bf16.mxu0 %v1379_v40  ;;  %757 = vmatprep.subr.bf16.mxu1 %v1418_v50  ;;  %v1467_v27 = vld [vmem:[%s1752_s28 + $0x24] ss:$8 sps:$4 sm:$0xff]   ;;  %v1458_v28 = vld [vmem:[%s1770_s5 + $0x1e8] ss:$16 sps:$4 sm:$0xff]   ;;  %v1470_v30 = vld [vmem:[%s1752_s28 + $0x34] ss:$8 sps:$4 sm:$0xff]  }
  0xfd   : > { %v1465_v29 = vld [vmem:[%s1752_s28 + $0x20] ss:$8 sps:$4 sm:$0xff]   ;;  %v1468_v31 = vld [vmem:[%s1752_s28 + $0x30] ss:$8 sps:$4 sm:$0xff]   ;;  %v1473_v32 = vld [vmem:[%s1752_s28 + $0x44] ss:$8 sps:$4 sm:$0xff]  }
  0xfe   : > { %v1471_v33 = vld [vmem:[%s1752_s28 + $0x40] ss:$8 sps:$4 sm:$0xff]   ;;  %v1476_v34 = vld [vmem:[%s1752_s28 + $0x54] ss:$8 sps:$4 sm:$0xff]   ;;  %v1474_v35 = vld [vmem:[%s1752_s28 + $0x50] ss:$8 sps:$4 sm:$0xff]  }
  0xff   : > { %717 = vmatpush1.bf16.msra.mxu0 %v1381_v43  ;;  %758 = vmatpush1.bf16.msra.mxu1 %v1420_v53  ;;  %v1479_v36 = vld [vmem:[%s1752_s28 + $0x64] ss:$8 sps:$4 sm:$0xff]   ;;  %v1477_v37 = vld [vmem:[%s1752_s28 + $0x60] ss:$8 sps:$4 sm:$0xff]   ;;  %v1482_v38 = vld [vmem:[%s1752_s28 + $0x74] ss:$8 sps:$4 sm:$0xff]  }
 0x100   : > { %718 = vmatprep.subr.bf16.mxu0 %v1385_v44  ;;  %759 = vmatprep.subr.bf16.mxu1 %v1424_v54  ;;  %v1480_v39 = vld [vmem:[%s1752_s28 + $0x70] ss:$8 sps:$4 sm:$0xff]   ;;  %v1485_v40 = vld [vmem:[%s1752_s28 + $0x84] ss:$8 sps:$4 sm:$0xff]   ;;  %v1483_v41 = vld [vmem:[%s1752_s28 + $0x80] ss:$8 sps:$4 sm:$0xff]  }
 0x101   : > { %v1488_v42 = vld [vmem:[%s1752_s28 + $0x94] ss:$8 sps:$4 sm:$0xff]   ;;  %v1486_v43 = vld [vmem:[%s1752_s28 + $0x90] ss:$8 sps:$4 sm:$0xff]   ;;  %v1491_v44 = vld [vmem:[%s1752_s28 + $0xa4] ss:$8 sps:$4 sm:$0xff]  }
 0x102   : > { %v1489_v45 = vld [vmem:[%s1752_s28 + $0xa0] ss:$8 sps:$4 sm:$0xff]   ;;  %v1494_v46 = vld [vmem:[%s1752_s28 + $0xb4] ss:$8 sps:$4 sm:$0xff]   ;;  %v1504_v55 = vld [vmem:[%s1752_s28 + $0xf0] ss:$8 sps:$4 sm:$0xff]  }
 0x103   : > { %719 = vmatpush1.bf16.msra.mxu0 %v1387_v47  ;;  %760 = vmatpush1.bf16.msra.mxu1 %v1426_v59  ;;  %v1492_v47 = vld [vmem:[%s1752_s28 + $0xb0] ss:$8 sps:$4 sm:$0xff]   ;;  %v1495_v49 = vld [vmem:[%s1752_s28 + $0xc0] ss:$8 sps:$4 sm:$0xff]   ;;  %v1500_v50 = vld [vmem:[%s1752_s28 + $0xd4] ss:$8 sps:$4 sm:$0xff]  }
 0x104   : > { %720 = vmatprep.subr.bf16.mxu0 %v1391_v48  ;;  %761 = vmatprep.subr.bf16.mxu1 %v1430_v60  ;;  %v1497_v48 = vld [vmem:[%s1752_s28 + $0xc4] ss:$8 sps:$4 sm:$0xff]   ;;  %v1501_v53 = vld [vmem:[%s1752_s28 + $0xe0] ss:$8 sps:$4 sm:$0xff]   ;;  %v1506_v54 = vld [vmem:[%s1752_s28 + $0xf4] ss:$8 sps:$4 sm:$0xff]  }
 0x107   : > { %721 = vmatpush1.bf16.msra.mxu0 %v1393_v51  ;;  %762 = vmatpush1.bf16.msra.mxu1 %v1432_v63  ;;  %v1498_v51 = vld [vmem:[%s1752_s28 + $0xd0] ss:$8 sps:$4 sm:$0xff]  }
 0x108   : > { %722 = vmatprep.subr.bf16.mxu0 %v1397_v52  ;;  %763 = vmatprep.subr.bf16.mxu1 %v1436_v0  ;;  %v1503_v52 = vld [vmem:[%s1752_s28 + $0xe4] ss:$8 sps:$4 sm:$0xff]  }
 0x10b   : > { %723 = vmatpush1.bf16.msra.mxu0 %v1399_v56  ;;  %764 = vmatpush1.bf16.msra.mxu1 %v1438_v3 }
 0x10c   : > { %724 = vmatprep.subr.bf16.mxu0 %v1403_v58  ;;  %765 = vmatprep.subr.bf16.mxu1 %v1441_v4 }
 0x10f   : > { %725 = vmatpush1.bf16.msra.mxu0 %v1405_v61  ;;  %766 = vmatpush1.bf16.msra.mxu1 %v1443_v7 }
 0x110   : > { %726 = vmatprep.subr.bf16.mxu0 %v1409_v62  ;;  %767 = vmatprep.subr.bf16.mxu1 %v1444_v8 }
 0x113   : > { %727 = vmatpush1.bf16.msra.mxu0 %v1411_v1  ;;  %768 = vmatpush1.bf16.msra.mxu1 %v1446_v12 }
 0x114   : > { %728 = vmatprep.subr.bf16.mxu0 %v1415_v2  ;;  %769 = vmatprep.subr.bf16.mxu1 %v1447_v13 }
 0x117   : > { %729 = vmatpush1.bf16.msra.mxu0 %v1417_v5  ;;  %770 = vmatpush1.bf16.msra.mxu1 %v1449_v15 }
 0x118   : > { %730 = vmatprep.subr.bf16.mxu0 %v1421_v6  ;;  %771 = vmatprep.subr.bf16.mxu1 %v1450_v16 }
 0x11b   : > { %731 = vmatpush1.bf16.msra.mxu0 %v1423_v9  ;;  %772 = vmatpush1.bf16.msra.mxu1 %v1452_v19  ;;  %v1041_v19 = vld [vmem:[%s1765_s6 + $0x8] sm:$0xff] (!%p1174_p9) }
 0x11c   : > { %732 = vmatprep.subr.bf16.mxu0 %v1427_v10  ;;  %773 = vmatprep.subr.bf16.mxu1 %v1453_v21 }
 0x11f   : > { %733 = vmatpush1.bf16.msra.mxu0 %v1429_v11  ;;  %774 = vmatpush1.bf16.msra.mxu1 %v1455_v24 }
 0x120   : > { %734 = vmatprep.subr.bf16.mxu0 %v1433_v14  ;;  %775 = vmatprep.subr.bf16.mxu1 %v1456_v25 }
 0x123   : > { %735 = vmatpush1.bf16.msra.mxu0 %v1435_v17  ;;  %776 = vmatpush1.bf16.msra.mxu1 %v1458_v28 }
 0x124   : > { %996 = vmatprep.subr.bf16.mxu0 %v1461_v18  ;;  %v1040_v18 = vld [vmem:[%s1765_s6] sm:$0xff] (!%p1174_p9) }
 0x126   : > { %737 = vmatmul.mubr.bf16.vlgmr.msra.gmra.mrb[0].mxu0 %v1176_v20  ;;  %778 = vmatmul.mubr.bf16.vlgmr.msra.gmra.mrb[0].mxu1 %v1176_v20 }
 0x127   : > { %997 = vmatpush1.bf16.msra.mxu0 %v1459_v22 }
 0x128   : > { %998 = vmatprep.subr.bf16.mxu0 %v1464_v23 }
 0x12b   : > { %999 = vmatpush1.bf16.msra.mxu0 %v1462_v26 }
 0x12c   : > { %1000 = vmatprep.subr.bf16.mxu0 %v1467_v27 }
 0x12f   : > { %1001 = vmatpush1.bf16.msra.mxu0 %v1465_v29 }
 0x130   : > { %1002 = vmatprep.subr.bf16.mxu0 %v1470_v30 }
 0x133   : > { %1003 = vmatpush1.bf16.msra.mxu0 %v1468_v31 }
 0x134   : > { %1004 = vmatprep.subr.bf16.mxu0 %v1473_v32 }
 0x137   : > { %1005 = vmatpush1.bf16.msra.mxu0 %v1471_v33 }
 0x138   : > { %1006 = vmatprep.subr.bf16.mxu0 %v1476_v34 }
 0x13b   : > { %1007 = vmatpush1.bf16.msra.mxu0 %v1474_v35 }
 0x13c   : > { %1008 = vmatprep.subr.bf16.mxu0 %v1479_v36 }
 0x13f   : > { %1009 = vmatpush1.bf16.msra.mxu0 %v1477_v37 }
 0x140   : > { %1010 = vmatprep.subr.bf16.mxu0 %v1482_v38 }
 0x143   : > { %1011 = vmatpush1.bf16.msra.mxu0 %v1480_v39 }
 0x144   : > { %1012 = vmatprep.subr.bf16.mxu0 %v1485_v40 }
 0x147   : > { %1013 = vmatpush1.bf16.msra.mxu0 %v1483_v41 }
 0x148   : > { %1014 = vmatprep.subr.bf16.mxu0 %v1488_v42 }
 0x14b   : > { %1015 = vmatpush1.bf16.msra.mxu0 %v1486_v43 }
 0x14c   : > { %1016 = vmatprep.subr.bf16.mxu0 %v1491_v44 }
 0x14f   : > { %1017 = vmatpush1.bf16.msra.mxu0 %v1489_v45 }
 0x150   : > { %1018 = vmatprep.subr.bf16.mxu0 %v1494_v46 }
 0x153   : > { %1019 = vmatpush1.bf16.msra.mxu0 %v1492_v47 }
 0x154   : > { %1020 = vmatprep.subr.bf16.mxu0 %v1497_v48 }
 0x157   : > { %1021 = vmatpush1.bf16.msra.mxu0 %v1495_v49 }
 0x158   : > { %1022 = vmatprep.subr.bf16.mxu0 %v1500_v50 }
 0x15b   : > { %1023 = vmatpush1.bf16.msra.mxu0 %v1498_v51 }
 0x15c   : > { %1024 = vmatprep.subr.bf16.mxu0 %v1503_v52 }
 0x15f   : > { %1025 = vmatpush1.bf16.msra.mxu0 %v1501_v53 }
 0x160   : > { %1026 = vmatprep.subr.bf16.mxu0 %v1506_v54 }
 0x163   : > { %1027 = vmatpush1.bf16.msra.mxu0 %v1504_v55 }
 0x1f9   : > { %v738_v56 = vpop.f32.mrb[0].mxu0  ;;  %v779_v62 = vpop.f32.mrb[0].mxu1 }
 0x1fa   : > { %v1242_v57 = vmul.f32 -1.442695, %v738_v56  ;;  %v740_v58 = vpop.f32.mrb[1].mxu0  ;;  %v781_v63 = vpop.f32.mrb[1].mxu1 }
 0x1fb   : > { %v1243_v59 = vmul.f32 -1.442695, %v740_v58  ;;  %v742_v60 = vpop.f32.mrb[2].mxu0  ;;  %v783_v0 = vpop.f32.mrb[2].mxu1 }
 0x1fc   : > { %1507 = vpow2.f32 %v1242_v57  ;;  %v743_v61 = vpop.f32.mrb[3].mxu0  ;;  %v784_v2 = vpop.f32.mrb[3].mxu1 }
 0x1fd   : > { %1509 = vpow2.f32 %v1243_v59 }
 0x206   : > { %v1508_v1 = vpop.eup %1507 }
 0x207   : > { %v1510_v3 = vpop.eup %1509  ;;  %v792_v4 = vadd.f32 1.0, %v1508_v1 }
 0x208   : > { %v793_v5 = vadd.f32 1.0, %v1510_v3 }
 0x209   : > { %1511 = vrcp.f32 %v792_v4 }
 0x20a   : > { %1513 = vrcp.f32 %v793_v5 }
 0x213   : > { %v1512_v6 = vpop.eup %1511 }
 0x214   : > { %v1514_v7 = vpop.eup %1513  ;;  %v798_v8 = vmul.f32 %v1512_v6, %v738_v56 }
 0x215   : > { %v799_v9 = vmul.f32 %v1514_v7, %v740_v58 }
 0x216   : > { %v800_v10 = vmul.f32 %v798_v8, %v779_v62 }
 0x217   : > { %v801_v11 = vmul.f32 %v799_v9, %v781_v63 }
 0x218   : > { %v802_v13 = vpack.c.bf16 %v800_v10, %v800_v10 }
 0x219   : > { %v803_v12 = vpack.c.bf16 %v801_v11, %v801_v11 }
 0x21b   : > { %1028 = vmatprep.mubr.bf16.mxu0 %v803_v12 }
 0x21c   : > { %1029 = vmatmul.mubr.bf16.vlgmr.msra.gmra.mrb[4].mxu0 %v802_v13 }
 0x2ec   : > { %1039 = sbr.rel (%p1174_p9) target bundleno = 756 (0x2f4), region = 48 }
 0x2ef   : > { %v1030_v14 = vpop.f32.mrb[4].mxu0 }
 0x2f0   : > { %v1032_v15 = vpop.f32.mrb[5].mxu0  ;;  %v1042_v20 = vadd.f32 (!%p1174_p9), %v1040_v18, %v1030_v14 }
 0x2f1   : > { %v1034_v16 = vpop.f32.mrb[6].mxu0  ;;  %v1043_v21 = vadd.f32 (!%p1174_p9), %v1041_v19, %v1032_v15 }
 0x2f2   : > { %v1035_v17 = vpop.f32.mrb[7].mxu0  ;;  %1044 = vst [vmem:[%s1775_s15] sm:$0xff] (!%p1174_p9), %v1042_v20 }
 0x2f3   : > { %1045 = vst [vmem:[%s1775_s15 + $0x8] sm:$0xff] %v1043_v21 }
 0x2f4 PF: > { %p1277_p6 = scmp.le.s32.totalorder %s1595_s18, 0 }
 0x2f6   : > { %1049 = sbr.rel (%p1277_p6) target bundleno = 766 (0x2fe), region = 52 }
 0x2fa   : > { %v1050_v22 = vld [vmem:[%s1775_s15] sm:$0xff] (!%p1277_p6)  ;;  %v1051_v23 = vld [vmem:[%s1775_s15 + $0x8] sm:$0xff] (!%p1277_p6) }
 0x2fb   : > { %v1052_v24 = vadd.f32 (!%p1277_p6), %v1050_v22, %v1030_v14  ;;  %v1053_v25 = vadd.f32 (!%p1277_p6), %v1051_v23, %v1032_v15 }
 0x2fd   : > { %1054 = vst [vmem:[%s1775_s15] sm:$0xff] %v1052_v24  ;;  %1055 = vst [vmem:[%s1775_s15 + $0x8] sm:$0xff] %v1053_v25 }
 0x2fe PF: > { %s17_s22 = sadd.s32 1, %s1611_s22   ;;  %s1924_s15 = smov %s1587_s16 }
 0x2ff   : > { %p14_p7 = scmp.ge.s32.totalorder %s17_s22, 6   ;;  %s1925_s16 = smov %s1591_s17 }
 0x300   : > { %s1926_s17 = smov %s1699_s29  ;;  %s1927_s18 = smov %s1603_s20 }
 0x301   : > { %s1928_s19 = smov %s1607_s21  ;;  %s1929_s20 = smov %s1932_s24 }
 0x302   : > { %s1930_s21 = smov %s1936_s25  ;;  %16 = sbr.rel (!%p14_p7) target bundleno = 5 (0x5), region = 94 }
 0x309   :  { %1077 = vsyncpa [#allocation4], 1 }
 0x30a   :  { %1079 = vsyncpa [#allocation4 + $0x1], 1 }

// kernel: qwen_forward.3
= control target key start
LH: loop header
LB: loop body
LE: loop exit
PB: predicated region body
PF: predicated region fallthrough
CT: control target
= control target key end

     0   :  { %s2167_s0 = inlined_call_operand.vmem [shape: f32[2,8,256], index: 0, kind: input, shape index: {}]   ;;  %s2168_s1 = inlined_call_operand.vmem [shape: f32[1,256], index: 1, kind: input, shape index: {}]   ;;  %s2169_s2 = inlined_call_operand.hbm [shape: bf16[2,256,384], index: 2, kind: input, shape index: {}]   ;;  %s2170_s3 = inlined_call_operand.vmem [shape: bf16[2,128,256], index: 3, kind: input, shape index: {}]   ;;  %s2171_s4 = inlined_call_operand.hbm [shape: f32[8,128], index: 4, kind: input, shape index: {}]   ;;  %s2172_s5 = inlined_call_operand.hbm [shape: f32[8,128], index: 5, kind: input, shape index: {}]   ;;  %s2173_s6 = inlined_call_operand.hbm [shape: f32[8,8], index: 6, kind: input, shape index: {}]   ;;  %s2174_s7 = inlined_call_operand.vmem [shape: f32[2,8,256], index: 7, kind: output, shape index: {}]  }
   0x1   :  { %2179 = sst [smem:[#allocation13_spill]] %s2168_s1 }
   0x2   :  { %2180 = sst [smem:[#allocation14_spill]] %s2171_s4 }
   0x3   :  { %2181 = sst [smem:[#allocation15_spill]] %s2172_s5 }
   0x4   :  { %12 = vsyncpa [#allocation4], 0 }
   0x5   :  { %14 = vsyncpa [#allocation4 + $0x1], 0 }
   0x6   :  { %15 = vsyncpa [#allocation6], 0 }
   0x7   :  { %16 = vsyncpa [#allocation9], 0  ;;  %s1823_s24 = smov 0   ;;  %s1825_s25 = smov 0  }
   0x8   :  { %s1827_s26 = smov 0   ;;  %s1829_s27 = smov 0  }
   0x9   :  { %s1831_s28 = smov 0   ;;  %s1833_s29 = smov 0  }
   0xa   :  { %s1835_s30 = smov 0   ;;  %s1837_s8 = smov 0  }
   0xb LB: > { %s1243_s9 = sadd.s32 4294967295, %s1771_s8   ;;  %p101_p0 = scmp.ne.s32.totalorder %s1747_s25, %s1743_s24  ;;  %s1771_s8 = sphi %s1837_s8, %s22_s8   ;;  %s1767_s30 = sphi %s1835_s30, %s2200_s30   ;;  %s1763_s29 = sphi %s1833_s29, %s2199_s29   ;;  %s1759_s28 = sphi %s1831_s28, %s2198_s28   ;;  %s1755_s27 = sphi %s1829_s27, %s2197_s27   ;;  %s1751_s26 = sphi %s1827_s26, %s2196_s26   ;;  %s1747_s25 = sphi %s1825_s25, %s2195_s25   ;;  %s1743_s24 = sphi %s1823_s24, %s2194_s24  }
   0xc   : > { %p1863_p1 = scmp.eq.s32.totalorder %s1243_s9, 0  ;;  %p1245_p2 = scmp.ge.s32.totalorder %s1771_s8, 1 }
   0xd   : > { %p227_p3 = scmp.lt.s32.totalorder %s1771_s8, 5  ;;  %s1773_s13 = smov [#allocation5]  }
   0xe   : > { %s2182_s10 = scalar_select %p1863_p1, 1, 0 }
   0xf   : > { %p1871_p4 = por %p1863_p1, %p101_p0  ;;  %p1875_p5 = pnand %p1245_p2, %p227_p3 }
  0x10   : > { %s243_s14 = sshll.u32 %s1773_s13, 4  ;;  %s1774_s15 = smov [#allocation7]   ;;  %s244_s14 = int_to_ptr.vmem [resolvable:$true] %s243_s14 }
  0x11   : > { %s2183_s11 = scalar_select %p1871_p4, 1, 0 }
  0x12   : > { %s2184_s12 = scalar_select %p1875_p5, 1, 0 }
  0x13   : > { %p1393_p6 = pneg %p1875_p5  ;;  %s254_s16 = sshll.u32 %s1774_s15, 4  ;;  %s1887_s16 = int_to_ptr.vmem [resolvable:$true] %s254_s16 }
  0x14   : > { %s1775_s18 = smov [#allocation8]   ;;  %s2186_s4 = sld [smem:[#allocation14_spill]] }
  0x15   : > { %p1883_p7 = pnand %p1393_p6, %p1863_p1  ;;  %s265_s19 = sshll.u32 %s1775_s18, 4  ;;  %s1889_s19 = int_to_ptr.vmem [resolvable:$true] %s265_s19 }
  0x17   : > { %p1899_p9 = pneg %p1883_p7 }
  0x1a   : > { %s1583_s22 = scalar_lea.hbm %s2186_s4, 128 }
  0x1b   : > { %p1584_p8 = scmp.ne.s32.totalorder %s2186_s4, %s1583_s22  ;;  %p1590_p12 = scmp.lt.u32.totalorder %s1583_s22, %s2186_s4 }
  0x1d   : > { %p1586_p10 = pnand %p1899_p9, %p1584_p8 }
  0x1f   : > { %p1587_p11 = pneg %p1586_p10 }
  0x21   : > { %p1592_p13 = pnand %p1590_p12, %p1587_p11 }
  0x23   : > { %1595 = shalt.err (!%p1592_p13)
}
  0x24   : > { %s1596_s18 = scalar_lea.vmem %s244_s14, 128  ;;  %p1604_p6 = scmp.lt.s32.totalorder %s244_s14, %s244_s14 }
  0x25   : > { %p1597_p0 = scmp.ne.s32.totalorder %s244_s14, %s1596_s18  ;;  %p1605_p1 = scmp.lt.s32.totalorder %s1596_s18, %s1596_s18 }
  0x27   : > { %p1599_p2 = pnand %p1597_p0, %p1899_p9  ;;  %p1606_p4 = por %p1605_p1, %p1604_p6 }
  0x29   : > { %p1600_p3 = pneg %p1599_p2 }
  0x2b   : > { %p1607_p5 = pnand %p1606_p4, %p1600_p3 }
  0x2d   : > { %1610 = shalt.err (!%p1607_p5)
}
  0x2e   : > { %1396 = dma.hbm_to_vmem [thread:$0]  (!%p1883_p7), %s2186_s4, 128, %s244_s14, [#allocation6]  }
  0x2f   : > { %s2188_s5 = sld [smem:[#allocation15_spill]] }
  0x35   : > { %s1611_s24 = scalar_lea.hbm %s2188_s5, 128 }
  0x36   : > { %p1612_p8 = scmp.ne.s32.totalorder %s2188_s5, %s1611_s24  ;;  %p1618_p4 = scmp.lt.u32.totalorder %s1611_s24, %s2188_s5 }
  0x38   : > { %p1614_p10 = pnand %p1612_p8, %p1899_p9 }
  0x3a   : > { %p1615_p1 = pneg %p1614_p10 }
  0x3c   : > { %p1620_p5 = pnand %p1618_p4, %p1615_p1 }
  0x3e   : > { %1623 = shalt.err (!%p1620_p5)
}
  0x3f   : > { %s1624_s14 = scalar_lea.vmem %s1887_s16, 128  ;;  %p1632_p0 = scmp.lt.s32.totalorder %s1887_s16, %s1887_s16 }
  0x40   : > { %p1625_p11 = scmp.ne.s32.totalorder %s1887_s16, %s1624_s14  ;;  %p1633_p2 = scmp.lt.s32.totalorder %s1624_s14, %s1624_s14 }
  0x42   : > { %p1627_p12 = pnand %p1625_p11, %p1899_p9  ;;  %p1634_p3 = por %p1633_p2, %p1632_p0 }
  0x44   : > { %p1628_p13 = pneg %p1627_p12 }
  0x46   : > { %p1635_p6 = pnand %p1634_p3, %p1628_p13 }
  0x48   : > { %1638 = shalt.err (!%p1635_p6)
}
  0x49   : > { %1399 = dma.hbm_to_vmem [thread:$0]  (!%p1883_p7), %s2188_s5, 128, %s1887_s16, [#allocation6]  }
  0x4a   : > { %s1639_s23 = scalar_lea.hbm %s2173_s6, 128 }
  0x4b   : > { %p1640_p8 = scmp.ne.s32.totalorder %s2173_s6, %s1639_s23  ;;  %p1646_p4 = scmp.lt.u32.totalorder %s1639_s23, %s2173_s6 }
  0x4d   : > { %p1642_p10 = pnand %p1640_p8, %p1899_p9 }
  0x4f   : > { %p1643_p1 = pneg %p1642_p10 }
  0x51   : > { %p1648_p5 = pnand %p1646_p4, %p1643_p1 }
  0x53   : > { %1651 = shalt.err (!%p1648_p5)
}
  0x54   : > { %s1652_s16 = scalar_lea.vmem %s1889_s19, 128  ;;  %p1660_p0 = scmp.lt.s32.totalorder %s1889_s19, %s1889_s19 }
  0x55   : > { %p1653_p11 = scmp.ne.s32.totalorder %s1889_s19, %s1652_s16  ;;  %p1661_p2 = scmp.lt.s32.totalorder %s1652_s16, %s1652_s16 }
  0x57   : > { %p1655_p12 = pnand %p1653_p11, %p1899_p9  ;;  %p1662_p3 = por %p1661_p2, %p1660_p0 }
  0x59   : > { %p1656_p13 = pneg %p1655_p12 }
  0x5b   : > { %p1663_p6 = pnand %p1662_p3, %p1656_p13 }
  0x5d   : > { %1666 = shalt.err (!%p1663_p6)
}
  0x5e   : > { %1402 = dma.hbm_to_vmem [thread:$0]  (!%p1883_p7), %s2173_s6, 128, %s1889_s19, [#allocation9]  }
  0x5f   : > { %s31_s9 = sadd.s32 1, %s1763_s29  ;;  %s34_s17 = sadd.s32 1, %s1767_s30 }
  0x60   : > { %p32_p9 = scmp.ge.s32.totalorder %s31_s9, 2  ;;  %s88_s20 = sadd.s32 1, %s1751_s26 }
  0x61   : > { %p95_p8 = scmp.ne.s32.totalorder %s1751_s26, %s1747_s25  ;;  %p96_p10 = scmp.eq.s32.totalorder %s1771_s8, 0 }
  0x62   : > { %s2202_s9 = smov (%p32_p9, %s31_s9), 0  ;;  %s2204_s17 = smov (!%p32_p9, %s34_s17), %s1767_s30 }
  0x63   : > { %s85_s21 = ssub.s32 %s1763_s29, %s2202_s9  ;;  %p36_p1 = scmp.ge.s32.totalorder %s2204_s17, 2 }
  0x64   : > { %p86_p4 = scmp.eq.s32.totalorder %s85_s21, 0  ;;  %p97_p5 = por %p96_p10, %p95_p8 }
  0x65   : > { %p1410_p11 = scmp.lt.s32.totalorder %s1771_s8, 4  ;;  %s2206_s17 = smov (%p36_p1, %s2204_s17), 0 }
  0x66   : > { %s1976_s19 = scalar_select %p86_p4, %s1751_s26, %s88_s20  }
  0x67   : > { %s284_s22 = sand.u32 1, %s1751_s26   ;;  %s1377_s23 = smul.u32 6144, %s1763_s29 }
  0x68   : > { %s1376_s24 = smul.u32 384, %s284_s22  ;;  %p1985_p7 = pnand %p1410_p11, %p97_p5 }
  0x69   : > { %s1983_s18 = scalar_lea.hbm %s2169_s2, %s1377_s23  ;;  %s1991_s20 = scalar_lea.sflag [#allocation4], %s284_s22 }
  0x6a   : > { %s288_s14 = scalar_lea.vmem [#allocation3], %s1376_s24  ;;  %s1667_s21 = scalar_lea.hbm %s1983_s18, 6144 }
  0x6b   : > { %s295_s1 = sshll.u32 %s288_s14, 4  ;;  %p1668_p12 = scmp.ne.s32.totalorder %s1983_s18, %s1667_s21  ;;  %s1989_s1 = int_to_ptr.vmem [resolvable:$true] %s295_s1 }
  0x6c   : > { %p1669_p13 = pneg %p1985_p7  ;;  %s1672_s15 = scalar_lea.hbm %s2169_s2, 12288 }
  0x6d   : > { %p1673_p3 = scmp.lt.u32.totalorder %s1983_s18, %s2169_s2  ;;  %p1674_p6 = scmp.lt.u32.totalorder %s1672_s15, %s1667_s21 }
  0x6e   : > { %p1670_p0 = pnand %p1669_p13, %p1668_p12  ;;  %p1676_p8 = scmp.lt.u32.totalorder %s1667_s21, %s1983_s18 }
  0x6f   : > { %p1675_p9 = por %p1674_p6, %p1673_p3 }
  0x70   : > { %p1671_p2 = pneg %p1670_p0 }
  0x71   : > { %p1677_p10 = por %p1676_p8, %p1675_p9 }
  0x73   : > { %p1678_p1 = pnand %p1677_p10, %p1671_p2 }
  0x75   : > { %1681 = shalt.err (!%p1678_p1)
}
  0x76   : > { %s1682_s22 = scalar_lea.vmem %s1989_s1, 6144  ;;  %s1776_s24 = smov [#allocation3]  }
  0x77   : > { %p1683_p4 = scmp.ne.s32.totalorder %s1989_s1, %s1682_s22  ;;  %s1687_s14 = sshll.u32 %s1776_s24, 4  ;;  %s1688_s14 = int_to_ptr.vmem [resolvable:$false] %s1687_s14 }
  0x78   : > { %s1689_s4 = scalar_lea.vmem %s1688_s14, 12288  ;;  %p1690_p12 = scmp.lt.s32.totalorder %s1989_s1, %s1688_s14 }
  0x79   : > { %p1685_p5 = pnand %p1683_p4, %p1669_p13  ;;  %p1691_p0 = scmp.lt.s32.totalorder %s1689_s4, %s1682_s22 }
  0x7b   : > { %p1686_p11 = pneg %p1685_p5  ;;  %p1692_p3 = por %p1691_p0, %p1690_p12 }
  0x7d   : > { %p1693_p6 = pnand %p1692_p3, %p1686_p11 }
  0x7f   : > { %1696 = shalt.err (!%p1693_p6)
}
  0x80   : > { %s1777_s5 = smov 192   ;;  %s1778_s21 = smov 12  }
  0x81   : > { %1406 = dma.hbm_to_vmem [thread:$0]  (!%p1985_p7), %s1983_s18, 6144, %s1989_s1, %s1991_s20, %s1777_s5, %s1777_s5, %s1778_s21  }
  0x82   : > { %p2190_p13 = scmp.ne.s32.totalorder %s2184_s12, 0 }
  0x83   : > { %s317_s23 = sand.u32 (!%p2190_p13), 1, %s1747_s25   ;;  %p2191_p2 = scmp.ne.s32.totalorder (!%p2190_p13), %s2183_s11, 0 }
  0x84   : > { %315 = sbr.rel (%p2190_p13) target bundleno = 1696 (0x6a0), region = 48  ;;  %s318_s15 = scalar_lea.sflag (!%p2190_p13), [#allocation4], %s317_s23 }
  0x85   : > { %s1378_s13 = smul.u32 (!%p2190_p13), 384, %s317_s23 }
  0x87   : > { %s2022_s22 = scalar_lea.vmem (!%p2190_p13), [#allocation3], %s1378_s13 }
  0x8b   : > { %1730 = dma.done.wait (%p2191_p2), %s318_s15, 6144  }
  0x8c   : > { %1732 = vsyncadd (%p2191_p2), %s318_s15, 4294961152  ;;  %p2192_p9 = scmp.ne.s32.totalorder %s2182_s10, 0 }
  0x8e   : > { %1734 = dma.done.wait (%p2192_p9), [#allocation6], 256  }
  0x8f   : > { %1736 = vsyncadd (%p2192_p9), [#allocation6], 4294967040 }
  0x90   : > { %1738 = dma.done.wait (%p2192_p9), [#allocation9], 128  }
  0x91   : > { %1740 = vsyncadd (%p2192_p9), [#allocation9], 4294967168  ;;  %p374_p7 = scmp.lt.s32.totalorder %s1759_s28, 1  ;;  %p379_p8 = scmp.lt.s32.totalorder %s1755_s27, 1 }
  0x92   : > { %p1261_p10 = scmp.ne.s32.totalorder %s1755_s27, 0 }
  0x93   : > { %s2208_s28 = smov (!%p374_p7, %s1759_s28), 1  ;;  %v409_v7 = vlaneseq (!%p1261_p10)  ;;  %s2193_s13 = sld [smem:[#allocation13_spill]] (!%p1261_p10) }
  0x94   : > { %s380_s11 = scalar_select %p379_p8, %s1755_s27, 1 }
  0x95   : > { %s1334_s12 = sshll.u32 %s2208_s28, 4  ;;  %393 = sbr.rel (%p1261_p10) target bundleno = 320 (0x140), region = 68  ;;  %v410_v9 = vshrl.u32 (!%p1261_p10), %v409_v7, 7 }
  0x96   : > { %s2043_s1 = scalar_lea.vmem %s2167_s0, %s1334_s12  ;;  %s1335_s20 = sshll.u32 %s380_s11, 7 }
  0x97   : > { %s2048_s10 = scalar_lea.vmem %s2170_s3, %s1335_s20  ;;  %s2053_s21 = scalar_lea.vmem %s2174_s7, %s1334_s12  ;;  %v394_v0 = vld [vmem:[%s2043_s1] sm:$0xff] (!%p1261_p10)  ;;  %v395_v1 = vld [vmem:[%s2043_s1 + $0x8] sm:$0xff] (!%p1261_p10)  ;;  %v411_v10 = vsub.s32 (!%p1261_p10), 0, %v410_v9  ;;  %v415_v11 = vsub.s32 (!%p1261_p10), 1, %v410_v9 }
  0x98   : > { %v396_v2 = vmul.f32 (!%p1261_p10), %v394_v0, %v394_v0  ;;  %v397_v3 = vmul.f32 (!%p1261_p10), %v395_v1, %v395_v1 }
  0x99   : > { %v407_v12 = vld [vmem:[%s2193_s13] sm:$0x3] (!%p1261_p10) }
  0x9a   : > { %v398_v4 = vadd.f32 (!%p1261_p10), %v397_v3, %v396_v2  ;;  %v412_v13 = vrot.slane (!%p1261_p10), %v407_v12, %v411_v10  ;;  %v416_v14 = vrot.slane (!%p1261_p10), %v407_v12, %v415_v11 }
  0x9c   : > { %399 = vadd.xlane.f32.xlu0 %v398_v4 }
 0x129   : > { %v400_v5 = vpop.xlane.xlu0 %399 }
 0x12a   : > { %v402_v6 = vmul.f32 0.00390625, %v400_v5 }
 0x12c   : > { %v403_v8 = vadd.f32 1e-06, %v402_v6 }
 0x12e   : > { %1487 = vrsqrt.f32 %v403_v8 }
 0x138   : > { %v1488_v15 = vpop.eup %1487 }
 0x139   : > { %v405_v16 = vmul.f32 %v1488_v15, %v394_v0  ;;  %v406_v17 = vmul.f32 %v1488_v15, %v395_v1 }
 0x13b   : > { %v419_v18 = vmul.f32 %v412_v13, %v405_v16  ;;  %v420_v19 = vmul.f32 %v416_v14, %v406_v17 }
 0x13d   : > { %v1337_v20 = vpack.c.bf16 %v420_v19, %v419_v18 }
 0x13f   : > { %429 = vst [vmem:[#allocation2] sm:$0xff] %v1337_v20 }
 0x140 PF: > { %v1489_v21 = vld [vmem:[%s2022_s22 + $0x4] ss:$12 sps:$4 sm:$0xff]   ;;  %v1491_v22 = vld [vmem:[%s2022_s22] ss:$12 sps:$4 sm:$0xff]   ;;  %v1492_v23 = vld [vmem:[%s2022_s22 + $0x1c] ss:$12 sps:$4 sm:$0xff]  }
 0x141   : > { %758 = vmatprep.subr.bf16.mxu0 %v1489_v21  ;;  %v1494_v24 = vld [vmem:[%s2022_s22 + $0x18] ss:$12 sps:$4 sm:$0xff]   ;;  %v1495_v25 = vld [vmem:[%s2022_s22 + $0x34] ss:$12 sps:$4 sm:$0xff]   ;;  %v1497_v26 = vld [vmem:[%s2022_s22 + $0x30] ss:$12 sps:$4 sm:$0xff]  }
 0x142   : > { %759 = vmatpush1.bf16.msra.mxu0 %v1491_v22  ;;  %v1498_v27 = vld [vmem:[%s2022_s22 + $0x4c] ss:$12 sps:$4 sm:$0xff]   ;;  %v1500_v28 = vld [vmem:[%s2022_s22 + $0x48] ss:$12 sps:$4 sm:$0xff]   ;;  %v1501_v29 = vld [vmem:[%s2022_s22 + $0x64] ss:$12 sps:$4 sm:$0xff]  }
 0x143   : > { %760 = vmatprep.subr.bf16.mxu0 %v1492_v23  ;;  %v1503_v30 = vld [vmem:[%s2022_s22 + $0x60] ss:$12 sps:$4 sm:$0xff]   ;;  %v1504_v31 = vld [vmem:[%s2022_s22 + $0x7c] ss:$12 sps:$4 sm:$0xff]   ;;  %v1506_v32 = vld [vmem:[%s2022_s22 + $0x78] ss:$12 sps:$4 sm:$0xff]  }
 0x144   : > { %v1507_v33 = vld [vmem:[%s2022_s22 + $0x94] ss:$12 sps:$4 sm:$0xff]   ;;  %v1509_v34 = vld [vmem:[%s2022_s22 + $0x90] ss:$12 sps:$4 sm:$0xff]   ;;  %v1510_v36 = vld [vmem:[%s2022_s22 + $0xac] ss:$12 sps:$4 sm:$0xff]  }
 0x145   : > { %v1512_v38 = vld [vmem:[%s2022_s22 + $0xa8] ss:$12 sps:$4 sm:$0xff]   ;;  %v1513_v39 = vld [vmem:[%s2022_s22 + $0xc4] ss:$12 sps:$4 sm:$0xff]   ;;  %v1515_v40 = vld [vmem:[%s2022_s22 + $0xc0] ss:$12 sps:$4 sm:$0xff]  }
 0x146   : > { %761 = vmatpush1.bf16.msra.mxu0 %v1494_v24  ;;  %v430_v35 = vld [vmem:[#allocation2] sm:$0xff]  ;;  %v1519_v43 = vld [vmem:[%s2022_s22 + $0xf4] ss:$12 sps:$4 sm:$0xff]   ;;  %v1525_v47 = vld [vmem:[%s2022_s22 + $0x124] ss:$12 sps:$4 sm:$0xff]   ;;  %v1779_v56 = vmov 0.0  }
 0x147   : > { %762 = vmatprep.subr.bf16.mxu0 %v1495_v25  ;;  %v1264_v37 = vcombine.high %v430_v35, %v430_v35  ;;  %v1516_v41 = vld [vmem:[%s2022_s22 + $0xdc] ss:$12 sps:$4 sm:$0xff]   ;;  %v1518_v42 = vld [vmem:[%s2022_s22 + $0xd8] ss:$12 sps:$4 sm:$0xff]   ;;  %v1527_v48 = vld [vmem:[%s2022_s22 + $0x120] ss:$12 sps:$4 sm:$0xff]   ;;  %v1263_v55 = vcombine.low %v430_v35, %v430_v35 }
 0x148   : > { %v1521_v44 = vld [vmem:[%s2022_s22 + $0xf0] ss:$12 sps:$4 sm:$0xff]   ;;  %v1522_v45 = vld [vmem:[%s2022_s22 + $0x10c] ss:$12 sps:$4 sm:$0xff]   ;;  %v1524_v46 = vld [vmem:[%s2022_s22 + $0x108] ss:$12 sps:$4 sm:$0xff]  }
 0x149   : > { %790 = vmatprep.mubr.bf16.mxu0 %v1264_v37  ;;  %831 = vmatprep.mubr.bf16.mxu1 %v1264_v37  ;;  %v1528_v49 = vld [vmem:[%s2022_s22 + $0x13c] ss:$12 sps:$4 sm:$0xff]   ;;  %v1530_v50 = vld [vmem:[%s2022_s22 + $0x138] ss:$12 sps:$4 sm:$0xff]   ;;  %v1531_v51 = vld [vmem:[%s2022_s22 + $0x154] ss:$12 sps:$4 sm:$0xff]  }
 0x14a   : > { %763 = vmatpush1.bf16.msra.mxu0 %v1497_v26  ;;  %v1533_v52 = vld [vmem:[%s2022_s22 + $0x150] ss:$12 sps:$4 sm:$0xff]   ;;  %v1534_v53 = vld [vmem:[%s2022_s22 + $0x16c] ss:$12 sps:$4 sm:$0xff]   ;;  %v1536_v54 = vld [vmem:[%s2022_s22 + $0x168] ss:$12 sps:$4 sm:$0xff]  }
 0x14b   : > { %764 = vmatprep.subr.bf16.mxu0 %v1498_v27  ;;  %vm1780_vm0 = vmmov 0   ;;  %s1781_s15 = smov 64   ;;  %v839_v61 = vld [vmem:[#allocation5] sm:$0xff]  ;;  %v840_v62 = vld [vmem:[#allocation7] sm:$0xff]  ;;  %v1545_v15 = vld [vmem:[%s2022_s22 + $0x110] ss:$12 sps:$4 sm:$0xff]  }
 0x14c   : > { %v1539_v9 = vld [vmem:[%s2022_s22 + $0xc8] ss:$12 sps:$4 sm:$0xff]   ;;  %v1541_v11 = vld [vmem:[%s2022_s22 + $0xe0] ss:$12 sps:$4 sm:$0xff]   ;;  %v1543_v13 = vld [vmem:[%s2022_s22 + $0xf8] ss:$12 sps:$4 sm:$0xff]  }
 0x14d   : > { %v1540_v10 = vld [vmem:[%s2022_s22 + $0x8] ss:$12 sps:$4 sm:$0xff]   ;;  %1338 = vmatprep.subr.bf16.mxu1 %v1539_v9  ;;  %v1542_v12 = vld [vmem:[%s2022_s22 + $0x20] ss:$12 sps:$4 sm:$0xff]   ;;  %v1544_v14 = vld [vmem:[%s2022_s22 + $0x38] ss:$12 sps:$4 sm:$0xff]  }
 0x14e   : > { %765 = vmatpush1.bf16.msra.mxu0 %v1500_v28  ;;  %1339 = vmatpush3.bf16.msra.mxu1 %v1540_v10  ;;  %v1546_v16 = vld [vmem:[%s2022_s22 + $0x50] ss:$12 sps:$4 sm:$0xff]   ;;  %v1547_v17 = vld [vmem:[%s2022_s22 + $0x128] ss:$12 sps:$4 sm:$0xff]   ;;  %v1549_v19 = vld [vmem:[%s2022_s22 + $0x140] ss:$12 sps:$4 sm:$0xff]  }
 0x14f   : > { %766 = vmatprep.subr.bf16.mxu0 %v1501_v29  ;;  %1340 = vmatprep.subr.bf16.mxu1 %v1541_v11  ;;  %v1548_v18 = vld [vmem:[%s2022_s22 + $0x68] ss:$12 sps:$4 sm:$0xff]   ;;  %v1550_v20 = vld [vmem:[%s2022_s22 + $0x80] ss:$12 sps:$4 sm:$0xff]   ;;  %v1551_v21 = vld [vmem:[%s2022_s22 + $0x158] ss:$12 sps:$4 sm:$0xff]  }
 0x150   : > { %v1552_v22 = vld [vmem:[%s2022_s22 + $0x98] ss:$12 sps:$4 sm:$0xff]   ;;  %v1553_v23 = vld [vmem:[%s2022_s22 + $0x170] ss:$12 sps:$4 sm:$0xff]   ;;  %vm894_vm1 = vcmask 64512   ;;  %vm911_vm2 = vcmask 1043456  }
 0x151   : > { %v1554_v24 = vld [vmem:[%s2022_s22 + $0xb0] ss:$12 sps:$4 sm:$0xff]   ;;  %v1097_v11 = vld [vmem:[%s2043_s1 + $0x8] sm:$0xff] (!%p1261_p10) }
 0x152   : > { %767 = vmatpush1.bf16.msra.mxu0 %v1503_v30  ;;  %1341 = vmatpush3.bf16.msra.mxu1 %v1542_v12  ;;  %v853_v25 = vld [vmem:[#allocation8] sm:$0xff]  ;;  %v1096_v10 = vld [vmem:[%s2043_s1] sm:$0xff] (!%p1261_p10) }
 0x153   : > { %768 = vmatprep.subr.bf16.mxu0 %v1504_v31  ;;  %1342 = vmatprep.subr.bf16.mxu1 %v1543_v13 }
 0x156   : > { %769 = vmatpush1.bf16.msra.mxu0 %v1506_v32  ;;  %1343 = vmatpush3.bf16.msra.mxu1 %v1544_v14 }
 0x157   : > { %770 = vmatprep.subr.bf16.mxu0 %v1507_v33  ;;  %1344 = vmatprep.subr.bf16.mxu1 %v1545_v15 }
 0x15a   : > { %771 = vmatpush1.bf16.msra.mxu0 %v1509_v34  ;;  %1345 = vmatpush3.bf16.msra.mxu1 %v1546_v16 }
 0x15b   : > { %772 = vmatprep.subr.bf16.mxu0 %v1510_v36  ;;  %1346 = vmatprep.subr.bf16.mxu1 %v1547_v17 }
 0x15e   : > { %773 = vmatpush1.bf16.msra.mxu0 %v1512_v38  ;;  %1347 = vmatpush3.bf16.msra.mxu1 %v1548_v18 }
 0x15f   : > { %774 = vmatprep.subr.bf16.mxu0 %v1513_v39  ;;  %1348 = vmatprep.subr.bf16.mxu1 %v1549_v19 }
 0x162   : > { %775 = vmatpush1.bf16.msra.mxu0 %v1515_v40  ;;  %1349 = vmatpush3.bf16.msra.mxu1 %v1550_v20 }
 0x163   : > { %776 = vmatprep.subr.bf16.mxu0 %v1516_v41  ;;  %1350 = vmatprep.subr.bf16.mxu1 %v1551_v21 }
 0x166   : > { %777 = vmatpush1.bf16.msra.mxu0 %v1518_v42  ;;  %1351 = vmatpush3.bf16.msra.mxu1 %v1552_v22 }
 0x167   : > { %778 = vmatprep.subr.bf16.mxu0 %v1519_v43  ;;  %1352 = vmatprep.subr.bf16.mxu1 %v1553_v23 }
 0x16a   : > { %779 = vmatpush1.bf16.msra.mxu0 %v1521_v44  ;;  %1353 = vmatpush3.bf16.msra.mxu1 %v1554_v24  ;;  %v1557_v44 = vld [vmem:[%s2048_s10 + $0x4] ss:$8 sps:$4 sm:$0xff]  }
 0x16b   : > { %780 = vmatprep.subr.bf16.mxu0 %v1522_v45  ;;  %1370 = vmatprep.subr.bf16.mxu1 %v1779_v56 }
 0x16d   : > { %832 = vmatmul.mubr.bf16.vlgmr.msra.gmra.mrb[0].mxu1 %v1263_v55 }
 0x16e   : > { %781 = vmatpush1.bf16.msra.mxu0 %v1524_v46  ;;  %1372 = vmatprep.mubr.msk.bf16.mxu1 %vm1780_vm0, %v1779_v56 }
 0x16f   : > { %782 = vmatprep.subr.bf16.mxu0 %v1525_v47 }
 0x172   : > { %783 = vmatpush1.bf16.msra.mxu0 %v1527_v48  ;;  %v1555_v48 = vld [vmem:[%s2048_s10] ss:$8 sps:$4 sm:$0xff]  }
 0x173   : > { %784 = vmatprep.subr.bf16.mxu0 %v1528_v49 }
 0x176   : > { %785 = vmatpush1.bf16.msra.mxu0 %v1530_v50  ;;  %v1560_v50 = vld [vmem:[%s2048_s10 + $0x14] ss:$8 sps:$4 sm:$0xff]  }
 0x177   : > { %786 = vmatprep.subr.bf16.mxu0 %v1531_v51  ;;  %v1558_v51 = vld [vmem:[%s2048_s10 + $0x10] ss:$8 sps:$4 sm:$0xff]  }
 0x17a   : > { %787 = vmatpush1.bf16.msra.mxu0 %v1533_v52  ;;  %v1563_v52 = vld [vmem:[%s2048_s10 + $0x24] ss:$8 sps:$4 sm:$0xff]  }
 0x17b   : > { %788 = vmatprep.subr.bf16.mxu0 %v1534_v53  ;;  %v1561_v53 = vld [vmem:[%s2048_s10 + $0x20] ss:$8 sps:$4 sm:$0xff]  }
 0x17e   : > { %789 = vmatpush1.bf16.msra.mxu0 %v1536_v54  ;;  %v1566_v54 = vld [vmem:[%s2048_s10 + $0x34] ss:$8 sps:$4 sm:$0xff]  }
 0x17f   : > { %1364 = vmatprep.subr.bf16.mxu0 %v1779_v56 }
 0x181   : > { %791 = vmatmul.mubr.bf16.vlgmr.msra.gmra.mrb[0].mxu0 %v1263_v55  ;;  %v1564_v55 = vld [vmem:[%s2048_s10 + $0x30] ss:$8 sps:$4 sm:$0xff]  }
 0x182   : > { %1366 = vmatprep.mubr.msk.bf16.mxu0 %vm1780_vm0, %v1779_v56  ;;  %v1569_v56 = vld [vmem:[%s2048_s10 + $0x44] ss:$8 sps:$4 sm:$0xff]  }
 0x240   : > { %v1354_v32 = vpop.f32.mrb[0].mxu1 }
 0x241   : > { %v1355_v33 = vpop.f32.mrb[1].mxu1 }
 0x242   : > { %v1356_v34 = vadd.f32 %v1355_v33, %v1354_v32  ;;  %v1357_v35 = vpop.f32.mrb[2].mxu1 }
 0x243   : > { %v1358_v36 = vpop.f32.mrb[3].mxu1 }
 0x244   : > { %v907_v37 = vpack.c.bf16 %v1356_v34, %v1356_v34 }
 0x246   : > { %v913_v38 = vsel %vm911_vm2, %v907_v37, 0 }
 0x247   : > { %1371 = vmatpush3.bf16.msra.mxu1 %v913_v38 }
 0x248   : > { %1052 = vmatprep.subr.bf16.mxu1 %v1557_v44 }
 0x254   : > { %v792_v57 = vpop.f32.mrb[0].mxu0 }
 0x255   : > { %v794_v58 = vpop.f32.mrb[1].mxu0  ;;  %v841_v6 = vmul.f32 %v839_v61, %v792_v57 }
 0x256   : > { %847 = vrot.lane.b32.xlu0 %v794_v58, %s1781_s15  ;;  %v796_v59 = vpop.f32.mrb[2].mxu0  ;;  %v846_v0 = vmul.f32 %v839_v61, %v794_v58  ;;  %v1572_v58 = vld [vmem:[%s2048_s10 + $0x54] ss:$8 sps:$4 sm:$0xff]   ;;  %v1573_v61 = vld [vmem:[%s2048_s10 + $0x60] ss:$8 sps:$4 sm:$0xff]  }
 0x257   : > { %v797_v60 = vpop.f32.mrb[3].mxu0  ;;  %v1570_v59 = vld [vmem:[%s2048_s10 + $0x50] ss:$8 sps:$4 sm:$0xff]  }
 0x258   : > { %v1575_v60 = vld [vmem:[%s2048_s10 + $0x64] ss:$8 sps:$4 sm:$0xff]  }
 0x25a   : > { %842 = vrot.lane.b32.xlu0 %v792_v57, %s1781_s15  ;;  %v1567_v57 = vld [vmem:[%s2048_s10 + $0x40] ss:$8 sps:$4 sm:$0xff]  }
 0x2c8   : > { %v848_v63 = vpop.permute.xlu0 %847 }
 0x2c9   : > { %v849_v1 = vmul.f32 %v848_v63, %v840_v62  ;;  %v1576_v63 = vld [vmem:[%s2048_s10 + $0x70] ss:$8 sps:$4 sm:$0xff]  }
 0x2cb   : > { %v850_v2 = vadd.f32 %v849_v1, %v846_v0  ;;  %v1782_v0 = vmov 0  }
 0x2cc   : > { %v843_v3 = vpop.permute.xlu0 %842 }
 0x2cd   : > { %v852_v4 = vpack.c.bf16 %v850_v2, %v850_v2  ;;  %v844_v5 = vmul.f32 %v843_v3, %v840_v62  ;;  %v1578_v62 = vld [vmem:[%s2048_s10 + $0x74] ss:$8 sps:$4 sm:$0xff]  }
 0x2cf   : > { %1365 = vmatpush3.bf16.xpose.msra.mxu0 %v852_v4  ;;  %v845_v7 = vadd.f32 %v844_v5, %v841_v6 }
 0x2d1   : > { %v851_v8 = vpack.c.bf16 %v845_v7, %v845_v7 }
 0x2d6   : > { %1367 = vmatmul.mubr.bf16.vlgmr.msra.gmra.mrb[4].mxu0 %v851_v8 }
 0x3a9   : > { %v888_v26 = vpop.f32.mrb[4].mxu0 }
 0x3aa   : > { %v889_v27 = vadd.f32 %v888_v26, %v853_v25  ;;  %v1368_v28 = vpop.f32.mrb[5].mxu0 }
 0x3ab   : > { %v891_v29 = vpop.f32.mrb[6].mxu0 }
 0x3ac   : > { %v1369_v30 = vpop.f32.mrb[7].mxu0  ;;  %v895_v31 = vsel %vm894_vm1, %v889_v27, -inf }
 0x3ad   : > { %896 = vmax.xlane.f32.xlu1 %v895_v31 }
 0x43a   : > { %v897_v39 = vpop.xlane.xlu1 %896 }
 0x43b   : > { %v898_v40 = vsub.f32 %v889_v27, %v897_v39 }
 0x43d   : > { %v899_v41 = vmul.f32 1.442695, %v898_v40 }
 0x43f   : > { %1579 = vpow2.f32 %v899_v41 }
 0x449   : > { %v1580_v42 = vpop.eup %1579 }
 0x44a   : > { %v901_v43 = vsel %vm894_vm1, %v1580_v42, 0.0 }
 0x44b   : > { %902 = vadd.xlane.f32.xlu1 %v901_v43 }
 0x4d8   : > { %v903_v45 = vpop.xlane.xlu1 %902 }
 0x4d9   : > { %1581 = vrcp.f32 %v903_v45 }
 0x4e3   : > { %v1582_v46 = vpop.eup %1581 }
 0x4e4   : > { %v905_v47 = vmul.f32 %v1582_v46, %v1580_v42 }
 0x4e6   : > { %v906_v49 = vpack.c.bf16 %v905_v47, %v905_v47 }
 0x4e8   : > { %1373 = vmatmul.mubr.msk.bf16.vlgmr.msra.gmra.mrb[4].mxu1 %vm894_vm1, %v906_v49 }
 0x4e9   : > { %1053 = vmatpush1.bf16.msra.mxu1 %v1555_v48  ;;  %1084 = vmatprep.mubr.bf16.mxu1 %v1782_v0 }
 0x4ea   : > { %1054 = vmatprep.subr.bf16.mxu1 %v1560_v50 }
 0x4ed   : > { %1055 = vmatpush1.bf16.msra.mxu1 %v1558_v51 }
 0x4ee   : > { %1056 = vmatprep.subr.bf16.mxu1 %v1563_v52 }
 0x4f1   : > { %1057 = vmatpush1.bf16.msra.mxu1 %v1561_v53 }
 0x4f2   : > { %1058 = vmatprep.subr.bf16.mxu1 %v1566_v54 }
 0x4f5   : > { %1059 = vmatpush1.bf16.msra.mxu1 %v1564_v55 }
 0x4f6   : > { %1060 = vmatprep.subr.bf16.mxu1 %v1569_v56 }
 0x4f9   : > { %1061 = vmatpush1.bf16.msra.mxu1 %v1567_v57 }
 0x4fa   : > { %1062 = vmatprep.subr.bf16.mxu1 %v1572_v58 }
 0x4fd   : > { %1063 = vmatpush1.bf16.msra.mxu1 %v1570_v59 }
 0x4fe   : > { %1064 = vmatprep.subr.bf16.mxu1 %v1575_v60 }
 0x501   : > { %1065 = vmatpush1.bf16.msra.mxu1 %v1573_v61 }
 0x502   : > { %1066 = vmatprep.subr.bf16.mxu1 %v1578_v62 }
 0x505   : > { %1067 = vmatpush1.bf16.msra.mxu1 %v1576_v63 }
 0x5bb   : > { %v949_v1 = vpop.f32.mrb[4].mxu1 }
 0x5bc   : > { %v955_v2 = vpack.c.bf16 %v949_v1, %v949_v1  ;;  %v1374_v3 = vpop.f32.mrb[5].mxu1 }
 0x5bd   : > { %v952_v4 = vpop.f32.mrb[6].mxu1 }
 0x5be   : > { %v1375_v5 = vpop.f32.mrb[7].mxu1  ;;  %1085 = vmatmul.mubr.bf16.vlgmr.msra.gmra.mrb[8].mxu1 %v955_v2 }
 0x68e   : > { %1095 = sbr.rel (%p1261_p10) target bundleno = 1686 (0x696), region = 72 }
 0x691   : > { %v1086_v6 = vpop.f32.mrb[8].mxu1 }
 0x692   : > { %v1088_v7 = vpop.f32.mrb[9].mxu1  ;;  %v1098_v12 = vadd.f32 (!%p1261_p10), %v1096_v10, %v1086_v6 }
 0x693   : > { %v1090_v8 = vpop.f32.mrb[10].mxu1  ;;  %v1099_v13 = vadd.f32 (!%p1261_p10), %v1097_v11, %v1088_v7 }
 0x694   : > { %v1091_v9 = vpop.f32.mrb[11].mxu1  ;;  %1100 = vst [vmem:[%s2053_s21] sm:$0xff] (!%p1261_p10), %v1098_v12 }
 0x695   : > { %1101 = vst [vmem:[%s2053_s21 + $0x8] sm:$0xff] %v1099_v13 }
 0x696 PF: > { %p1331_p1 = scmp.le.s32.totalorder %s1755_s27, 0 }
 0x698   : > { %1105 = sbr.rel (%p1331_p1) target bundleno = 1696 (0x6a0), region = 76 }
 0x69c   : > { %v1106_v14 = vld [vmem:[%s2053_s21] sm:$0xff] (!%p1331_p1)  ;;  %v1107_v15 = vld [vmem:[%s2053_s21 + $0x8] sm:$0xff] (!%p1331_p1) }
 0x69d   : > { %v1108_v16 = vadd.f32 (!%p1331_p1), %v1106_v14, %v1086_v6  ;;  %v1109_v17 = vadd.f32 (!%p1331_p1), %v1107_v15, %v1088_v7 }
 0x69f   : > { %1110 = vst [vmem:[%s2053_s21] sm:$0xff] %v1108_v16  ;;  %1111 = vst [vmem:[%s2053_s21 + $0x8] sm:$0xff] %v1109_v17 }
 0x6a0 PF: > { %s22_s8 = sadd.s32 1, %s1771_s8   ;;  %s2194_s24 = smov %s1747_s25 }
 0x6a1   : > { %p19_p4 = scmp.ge.s32.totalorder %s22_s8, 6   ;;  %s2195_s25 = smov %s1751_s26 }
 0x6a2   : > { %s2196_s26 = smov %s1976_s19  ;;  %s2197_s27 = smov %s1763_s29 }
 0x6a3   : > { %s2198_s28 = smov %s1767_s30  ;;  %s2199_s29 = smov %s2202_s9 }
 0x6a4   : > { %s2200_s30 = smov %s2206_s17  ;;  %21 = sbr.rel (!%p19_p4) target bundleno = 11 (0xb), region = 118 }
 0x6ab   :  { %1133 = vsyncpa [#allocation4], 1 }
 0x6ac   :  { %1135 = vsyncpa [#allocation4 + $0x1], 1 }
 0x6ad   :  { %1136 = vsyncpa [#allocation6], 1 }
 0x6ae   :  { %1137 = vsyncpa [#allocation9], 1 }

</bundles_post_ra>
